<compile_context>
chip_gen: v7x
topology: tpu7x:2x2x1
jax: 0.10.0
libtpu: 0.0.40
codegen_flags: <defaults>
</compile_context>

<pallas_src>
import jax
import jax.numpy as jnp
from jax.experimental import pallas as pl
from jax.experimental.pallas import tpu as pltpu


# MXU-aligned tile sizes (multiples of 128; 256-aligned for v6e/v7x MXUs).
_TM = 256
_TN = 256
_TK = 512

# Below this FLOP volume the pallas_call dispatch/DMA overhead dominates; use
# a plain fused jnp.dot instead.
_SMALL_PROBLEM_ELEMS = 128 ** 3


def _mm_kernel(a_ref, b_ref, o_ref, acc_ref):
    k = pl.program_id(2)

    @pl.when(k == 0)
    def _init():
        acc_ref[...] = jnp.zeros_like(acc_ref)

    acc_ref[...] += jnp.dot(
        a_ref[...], b_ref[...], preferred_element_type=jnp.float32
    )

    @pl.when(k == pl.num_programs(2) - 1)
    def _finalize():
        o_ref[...] = acc_ref[...].astype(o_ref.dtype)


def _pad_to_multiple(x, row_mult, col_mult):
    r, c = x.shape
    pr = (-r) % row_mult
    pc = (-c) % col_mult
    if pr == 0 and pc == 0:
        return x
    return jnp.pad(x, ((0, pr), (0, pc)))


def pallas_mm(a: jax.Array, b: jax.Array) -> jax.Array:
    assert a.ndim == 2 and b.ndim == 2, "torch.mm semantics: 2-D operands only"
    M, K = a.shape
    K2, N = b.shape
    assert K == K2, f"inner dims must match: {a.shape} @ {b.shape}"

    out_dtype = jnp.promote_types(a.dtype, b.dtype)

    # --- small-shape fast path: let XLA handle it (fuses into surroundings) ---
    if M * N * K < _SMALL_PROBLEM_ELEMS:
        return jnp.dot(a, b, preferred_element_type=jnp.float32).astype(out_dtype)

    # --- general tiled MXU path ---
    a_p = _pad_to_multiple(a, _TM, _TK)
    b_p = _pad_to_multiple(b, _TK, _TN)
    Mp, Kp = a_p.shape
    _, Np = b_p.shape

    grid = (Mp // _TM, Np // _TN, Kp // _TK)

    out_p = pl.pallas_call(
        _mm_kernel,
        out_shape=jax.ShapeDtypeStruct((Mp, Np), out_dtype),
        grid=grid,
        in_specs=[
            pl.BlockSpec((_TM, _TK), lambda i, j, k: (i, k)),
            pl.BlockSpec((_TK, _TN), lambda i, j, k: (k, j)),
        ],
        out_specs=pl.BlockSpec((_TM, _TN), lambda i, j, k: (i, j)),
        scratch_shapes=[pltpu.VMEM((_TM, _TN), jnp.float32)],
        compiler_params=pltpu.CompilerParams(
            dimension_semantics=("parallel", "parallel", "arbitrary"),
        ),
    )(a_p, b_p)

    if (Mp, Np) != (M, N):
        out_p = out_p[:M, :N]
    return out_p


def model_forward(x0):
    # Mirrors: s0 = torch.mm(x0[0][0], x0[0][1]); return s0
    return pallas_mm(x0[0][0], x0[0][1])


if __name__ == "__main__":
    key = jax.random.PRNGKey(0)
    k_a, k_b, k_c, k_d = jax.random.split(key, 4)

    # 1) Shapes implied by the module (valid torch.mm: 2-D 3x3 @ 3x3).
    #    Tiny -> takes the fused jnp.dot fast path.
    a = jax.random.normal(k_a, (3, 3), dtype=jnp.float32)
    b = jax.random.normal(k_b, (3, 3), dtype=jnp.float32)
    x0 = ((a, b),)
    out_small = jax.block_until_ready(model_forward(x0))
    ref_small = a @ b
    assert out_small.shape == (3, 3)
    assert jnp.allclose(out_small, ref_small, atol=1e-5, rtol=1e-5)

    # 2) Exercise the tiled Pallas path (including the padding logic) with a
    #    modest, non-tile-multiple problem size.
    A = jax.random.normal(k_c, (384, 640), dtype=jnp.float32)
    B = jax.random.normal(k_d, (640, 320), dtype=jnp.float32)
    out_big = jax.block_until_ready(pallas_mm(A, B))
    ref_big = jnp.dot(A, B, preferred_element_type=jnp.float32)
    assert out_big.shape == (384, 320)
    assert jnp.allclose(out_big, ref_big, atol=1e-3, rtol=1e-3)

    print("KERNEL_OK")
</pallas_src>

<mosaic_0001>
module attributes {stable_mosaic.version = 11 : i64} {
  func.func @_mm_kernel(%arg0: i32, %arg1: i32, %arg2: i32, %arg3: memref<256x512xf32, #tpu.memory_space<vmem>>, %arg4: memref<512x256xf32, #tpu.memory_space<vmem>>, %arg5: memref<256x256xf32, #tpu.memory_space<vmem>>, %arg6: memref<256x256xf32, #tpu.memory_space<vmem>>) attributes {dimension_semantics = [#tpu.dimension_semantics<parallel>, #tpu.dimension_semantics<parallel>, #tpu.dimension_semantics<arbitrary>], iteration_bounds = array<i64: 2, 2, 2>, scalar_prefetch = 0 : i64, scratch_operands = 1 : i64, tpu.core_type = #tpu.core_type<tc>, window_params = [{transform_indices = @transform_0, window_bounds = array<i64: 256, 512>}, {transform_indices = @transform_1, window_bounds = array<i64: 512, 256>}, {transform_indices = @transform_2, window_bounds = array<i64: 256, 256>}]} {
    %c0_i32 = arith.constant 0 : i32
    %0 = arith.cmpi eq, %arg2, %c0_i32 : i32
    %1 = arith.extui %0 : i1 to i32
    %c0_i32_0 = arith.constant 0 : i32
    %2 = arith.cmpi ne, %1, %c0_i32_0 : i32
    scf.if %2 {
      %cst_9 = arith.constant 0.000000e+00 : f32
      %12 = vector.broadcast %cst_9 : f32 to vector<256x256xf32>
      %c0_10 = arith.constant 0 : index
      %c0_11 = arith.constant 0 : index
      %13 = vector.load %arg6[%c0_10, %c0_11] : memref<256x256xf32, #tpu.memory_space<vmem>>, vector<256x256xf32>
      tpu.vector_store %arg6[%c0_10, %c0_11], %12 {strides = array<i32>} : memref<256x256xf32, #tpu.memory_space<vmem>>, vector<256x256xf32>,
    } else {
    }
    %c0 = arith.constant 0 : index
    %c0_1 = arith.constant 0 : index
    %3 = vector.load %arg6[%c0, %c0_1] : memref<256x256xf32, #tpu.memory_space<vmem>>, vector<256x256xf32>
    %c0_2 = arith.constant 0 : index
    %c0_3 = arith.constant 0 : index
    %4 = vector.load %arg3[%c0_2, %c0_3] : memref<256x512xf32, #tpu.memory_space<vmem>>, vector<256x512xf32>
    %c0_4 = arith.constant 0 : index
    %c0_5 = arith.constant 0 : index
    %5 = vector.load %arg4[%c0_4, %c0_5] : memref<512x256xf32, #tpu.memory_space<vmem>>, vector<512x256xf32>
    %cst = arith.constant dense<0.000000e+00> : vector<256x256xf32>
    %6 = tpu.matmul %4, %5, %cst {dimension_numbers = #tpu.dot_dimension_numbers<[1], [0], [0], [1], [0, 0, 1, 1], [], []>} : vector<256x512xf32>, vector<512x256xf32>, vector<256x256xf32> -> vector<256x256xf32>
    %7 = arith.addf %3, %6 : vector<256x256xf32>
    %c0_6 = arith.constant 0 : index
    %c0_7 = arith.constant 0 : index
    %8 = vector.load %arg6[%c0_6, %c0_7] : memref<256x256xf32, #tpu.memory_space<vmem>>, vector<256x256xf32>
    tpu.vector_store %arg6[%c0_6, %c0_7], %7 {strides = array<i32>} : memref<256x256xf32, #tpu.memory_space<vmem>>, vector<256x256xf32>,
    %c1_i32 = arith.constant 1 : i32
    %9 = arith.cmpi eq, %arg2, %c1_i32 : i32
    %10 = arith.extui %9 : i1 to i32
    %c0_i32_8 = arith.constant 0 : i32
    %11 = arith.cmpi ne, %10, %c0_i32_8 : i32
    scf.if %11 {
      %c0_9 = arith.constant 0 : index
      %c0_10 = arith.constant 0 : index
      %12 = vector.load %arg6[%c0_9, %c0_10] : memref<256x256xf32, #tpu.memory_space<vmem>>, vector<256x256xf32>
      %c0_11 = arith.constant 0 : index
      %c0_12 = arith.constant 0 : index
      %13 = vector.load %arg5[%c0_11, %c0_12] : memref<256x256xf32, #tpu.memory_space<vmem>>, vector<256x256xf32>
      tpu.vector_store %arg5[%c0_11, %c0_12], %12 {strides = array<i32>} : memref<256x256xf32, #tpu.memory_space<vmem>>, vector<256x256xf32>,
    } else {
    }
    return
  }
  func.func @transform_0(%arg0: i32, %arg1: i32, %arg2: i32) -> (i32, i32) {
    %c0_i32 = arith.constant 0 : i32
    return %arg0, %arg2 : i32, i32
  }
  func.func @transform_1(%arg0: i32, %arg1: i32, %arg2: i32) -> (i32, i32) {
    %c0_i32 = arith.constant 0 : i32
    return %arg2, %arg1 : i32, i32
  }
  func.func @transform_2(%arg0: i32, %arg1: i32, %arg2: i32) -> (i32, i32) {
    %c0_i32 = arith.constant 0 : i32
    return %arg0, %arg1 : i32, i32
  }
}

</mosaic_0001>

<bundles_post_ra>
// kernel: tpu_custom_call.1
= control target key start
LH: loop header
LB: loop body
LE: loop exit
PB: predicated region body
PF: predicated region fallthrough
CT: control target
= control target key end

     0   :  { %s2956_s0 = inlined_call_operand.hbm [shape: f32[512,1024], index: 0, kind: input, shape index: {}]   ;;  %s2957_s1 = inlined_call_operand.hbm [shape: f32[1024,512], index: 1, kind: input, shape index: {}]   ;;  %s2958_s2 = inlined_call_operand.hbm [shape: f32[512,512], index: 2, kind: output, shape index: {}]  }
   0x1   :  { %2973 = sst [smem:[#allocation20_spill]] %s2956_s0 }
   0x2   :  { %2974 = sst [smem:[#allocation21_spill]] %s2958_s2 }
   0x3   :  { %7 = vsyncpa [#allocation4], 0 }
   0x4   :  { %9 = vsyncpa [#allocation4 + $0x1], 0 }
   0x5   :  { %10 = vsyncpa [#allocation7], 0 }
   0x6   :  { %12 = vsyncpa [#allocation7 + $0x1], 0 }
   0x7   :  { %13 = vsyncpa [#allocation5], 0 }
   0x8   :  { %15 = vsyncpa [#allocation5 + $0x1], 0  ;;  %s2173_s9 = smov 0   ;;  %s2175_s10 = smov 0  }
   0x9   :  { %s2177_s11 = smov 0   ;;  %s2179_s12 = smov 0  }
   0xa   :  { %s2181_s13 = smov 0   ;;  %s2183_s14 = smov 0  }
   0xb   :  { %s2185_s15 = smov 0   ;;  %s2187_s16 = smov 0  }
   0xc   :  { %s2189_s17 = smov 0   ;;  %s2191_s18 = smov 0  }
   0xd   :  { %s2193_s19 = smov 0   ;;  %s2195_s20 = smov 0  }
   0xe   :  { %s2197_s21 = smov 0   ;;  %s2199_s22 = smov 0  }
   0xf   :  { %s2201_s23 = smov 0   ;;  %s2203_s24 = smov 0  }
  0x10 LB: > { %2975 = sst [smem:[#allocation12_spill]] %s2120_s18  ;;  %s1540_s25 = sadd.s32 4294967295, %s2144_s24   ;;  %s2144_s24 = sphi %s2203_s24, %s21_s24   ;;  %s2140_s23 = sphi %s2201_s23, %s3018_s23   ;;  %s2136_s22 = sphi %s2199_s22, %s3031_s22   ;;  %s2132_s21 = sphi %s2197_s21, %s3030_s21   ;;  %s2128_s20 = sphi %s2195_s20, %s3015_s20   ;;  %s2124_s19 = sphi %s2193_s19, %s3029_s19   ;;  %s2120_s18 = sphi %s2191_s18, %s3028_s18   ;;  %s2116_s17 = sphi %s2189_s17, %s3027_s17   ;;  %s2112_s16 = sphi %s2187_s16, %s3026_s16   ;;  %s2108_s15 = sphi %s2185_s15, %s3025_s15   ;;  %s2104_s14 = sphi %s2183_s14, %s3024_s14   ;;  %s2100_s13 = sphi %s2181_s13, %s3023_s13   ;;  %s2096_s12 = sphi %s2179_s12, %s3022_s12   ;;  %s2092_s11 = sphi %s2177_s11, %s3021_s11   ;;  %s2088_s10 = sphi %s2175_s10, %s3020_s10   ;;  %s2084_s9 = sphi %s2173_s9, %s3019_s9  }
  0x11   : > { %2976 = sst [smem:[#allocation13_spill]] %s2124_s19  ;;  %s33_s26 = sadd.s32 1, %s2132_s21 }
  0x12   : > { %2977 = sst [smem:[#allocation14_spill]] %s2128_s20  ;;  %p2253_p0 = scmp.ge.s32.totalorder %s33_s26, 2 }
  0x13   : > { %2978 = sst [smem:[#allocation15_spill]] %s2140_s23  ;;  %p56_p1 = scmp.ne.s32.totalorder %s2116_s17, %s2112_s16 }
  0x14   : > { %s3033_s26 = smov (%p2253_p0, %s33_s26), 0  ;;  %p2964_p2 = scmp.eq.s32.totalorder %s2144_s24, 0 }
  0x15   : > { %2980 = sst [smem:[#allocation16_spill]] %s3033_s26  ;;  %p62_p3 = scmp.ne.s32.totalorder %s2112_s16, %s2108_s15 }
  0x16   : > { %s2269_s30 = ssub.s32 %s2132_s21, %s3033_s26  ;;  %p2271_p4 = scmp.eq.s32.totalorder %s1540_s25, 0 }
  0x17   : > { %p2277_p5 = por %p2964_p2, %p56_p1  ;;  %p2281_p6 = scmp.eq.s32.totalorder %s1540_s25, 7 }
  0x18   : > { %s2981_s3 = scalar_select %p2271_p4, 1, 0 }
  0x19   : > { %s2983_s5 = scalar_select %p2281_p6, 1, 0 }
  0x1a   : > { %p2287_p7 = por %p2271_p4, %p62_p3  ;;  %p2963_p8 = scmp.lt.s32.totalorder %s2144_s24, 8 }
  0x1b   : > { %s142_s7 = sand.u32 1, %s2116_s17   ;;  %s1546_s15 = sshll.u32 %s2132_s21, 2 }
  0x1c   : > { %s2984_s6 = scalar_select %p2287_p7, 1, 0 }
  0x1d   : > { %s1544_s8 = sshll.u32 %s142_s7, 10  ;;  %s1567_s29 = sshll.u32 %s2140_s23, 8 }
  0x1e   : > { %2985 = sst [smem:[#allocation17_spill]] %s2984_s6  ;;  %s146_s28 = scalar_lea.vmem [#allocation3], %s1544_s8 }
  0x1f   : > { %s156_s26 = sshll.u32 %s146_s28, 4  ;;  %s153_s2 = sadd.s32 %s1567_s29, %s1546_s15  ;;  %s2295_s26 = int_to_ptr.vmem [resolvable:$true] %s156_s26 }
  0x20   : > { %s1548_s20 = sshll.u32 %s153_s2, 7  ;;  %p2301_p9 = pnand %p2963_p8, %p2277_p5 }
  0x21   : > { %s2987_s0 = sld [smem:[#allocation20_spill]]  ;;  %s2311_s28 = scalar_lea.sflag [#allocation4], %s142_s7 }
  0x22   : > { %p1920_p12 = pneg %p2301_p9 }
  0x27   : > { %s2308_s6 = scalar_lea.hbm %s2987_s0, %s1548_s20  ;;  %s1923_s20 = scalar_lea.hbm %s2987_s0, 65536 }
  0x28   : > { %s1918_s2 = scalar_lea.hbm %s2308_s6, 16384  ;;  %p1924_p3 = scmp.lt.u32.totalorder %s2308_s6, %s2987_s0 }
  0x29   : > { %p1919_p11 = scmp.ne.s32.totalorder %s2308_s6, %s1918_s2  ;;  %p1925_p5 = scmp.lt.u32.totalorder %s1923_s20, %s1918_s2 }
  0x2a   : > { %p1927_p2 = scmp.lt.u32.totalorder %s1918_s2, %s2308_s6 }
  0x2b   : > { %p1921_p13 = pnand %p1920_p12, %p1919_p11  ;;  %p1926_p8 = por %p1925_p5, %p1924_p3 }
  0x2d   : > { %p1922_p1 = pneg %p1921_p13  ;;  %p1928_p10 = por %p1927_p2, %p1926_p8 }
  0x2f   : > { %p1929_p7 = pnand %p1928_p10, %p1922_p1 }
  0x31   : > { %1932 = shalt.err (!%p1929_p7)
}
  0x32   : > { %s1933_s7 = scalar_lea.vmem %s2295_s26, 16384  ;;  %s2146_s8 = smov [#allocation3]  }
  0x33   : > { %p1934_p11 = scmp.ne.s32.totalorder %s2295_s26, %s1933_s7  ;;  %s1938_s15 = sshll.u32 %s2146_s8, 4  ;;  %s1939_s15 = int_to_ptr.vmem [resolvable:$false] %s1938_s15 }
  0x34   : > { %s1940_s18 = scalar_lea.vmem %s1939_s15, 32768  ;;  %p1941_p4 = scmp.lt.s32.totalorder %s2295_s26, %s1939_s15 }
  0x35   : > { %p1936_p13 = pnand %p1934_p11, %p1920_p12  ;;  %p1942_p3 = scmp.lt.s32.totalorder %s1940_s18, %s1933_s7 }
  0x37   : > { %p1937_p6 = pneg %p1936_p13  ;;  %p1943_p5 = por %p1942_p3, %p1941_p4 }
  0x39   : > { %p1944_p2 = pnand %p1943_p5, %p1937_p6 }
  0x3b   : > { %1947 = shalt.err (!%p1944_p2)
}
  0x3c   : > { %s2147_s2 = smov 1024   ;;  %s2967_s19 = smov 512  }
  0x3d   : > { %s2149_s20 = smov 32   ;;  %p188_p4 = scmp.lt.s32.totalorder %s2144_s24, 9 }
  0x3e   : > { %1771 = dma.hbm_to_vmem [thread:$0]  (!%p2301_p9), %s2308_s6, 16384, %s2295_s26, %s2311_s28, %s2147_s2, %s2967_s19, %s2149_s20  }
  0x3f   : > { %p2988_p6 = scmp.ge.s32.totalorder %s2144_s24, 1  ;;  %s1541_s4 = sadd.s32 4294967294, %s2144_s24  }
  0x40   : > { %s36_s7 = sadd.s32 1, %s2136_s22  ;;  %s77_s8 = sadd.s32 1, %s2104_s14 }
  0x41   : > { %p2343_p7 = pnand %p2988_p6, %p188_p4  ;;  %s3035_s7 = smov (!%p2253_p0, %s36_s7), %s2136_s22 }
  0x42   : > { %p84_p8 = scmp.ne.s32.totalorder %s2104_s14, %s2100_s13  ;;  %p38_p10 = scmp.ge.s32.totalorder %s3035_s7, 2 }
  0x43   : > { %p90_p9 = scmp.ne.s32.totalorder %s2100_s13, %s2096_s12  ;;  %p2990_p12 = scmp.eq.s32.totalorder %s2144_s24, 0 }
  0x44   : > { %s105_s6 = sadd.s32 1, %s2092_s11  ;;  %s3037_s7 = smov (%p38_p10, %s3035_s7), 0 }
  0x45   : > { %p2359_p1 = por %p84_p8, %p2990_p12  ;;  %2992 = sst [smem:[#allocation18_spill]] %s3037_s7 }
  0x46   : > { %s2993_s25 = sadd.s32 1, %s2140_s23  ;;  %s73_s27 = ssub.s32 %s2136_s22, %s3037_s7 }
  0x47   : > { %s3039_s25 = smov (!%p38_p10, %s2993_s25), %s2140_s23  ;;  %p2994_p0 = scmp.ne.s32.totalorder %s2981_s3, 0 }
  0x48   : > { %p42_p13 = scmp.ge.s32.totalorder %s3039_s25, 2  ;;  %s74_s12 = sor.u32 %s73_s27, %s2269_s30 }
  0x49   : > { %p2373_p11 = por %p90_p9, %p2994_p0  ;;  %p75_p3 = scmp.eq.s32.totalorder %s74_s12, 0 }
  0x4a   : > { %p115_p5 = scmp.ne.s32.totalorder %s2092_s11, %s2088_s10  ;;  %s3041_s25 = smov (%p42_p13, %s3039_s25), 0 }
  0x4b   : > { %s2995_s28 = scalar_select %p2373_p11, 1, 0 }
  0x4c   : > { %2996 = sst [smem:[#allocation19_spill]] %s3041_s25  ;;  %s44_s3 = ssub.s32 %s2140_s23, %s3041_s25 }
  0x4d   : > { %s2383_s15 = scalar_select %p75_p3, %s2104_s14, %s77_s8  }
  0x4e   : > { %p2997_p2 = scmp.ne.s32.totalorder %s2983_s5, 0  ;;  %s46_s2 = sor.u32 %s2269_s30, %s44_s3 }
  0x4f   : > { %s102_s20 = sor.u32 %s73_s27, %s44_s3  ;;  %p47_p6 = scmp.eq.s32.totalorder %s46_s2, 0 }
  0x50   : > { %p2389_p4 = por %p2997_p2, %p115_p5  ;;  %p103_p8 = scmp.eq.s32.totalorder %s102_s20, 0 }
  0x51   : > { %p121_p10 = scmp.ne.s32.totalorder %s2088_s10, %s2084_s9  ;;  %p122_p9 = scmp.eq.s32.totalorder %s1541_s4, 7 }
  0x52   : > { %s2998_s18 = scalar_select %p2389_p4, 1, 0 }
  0x53   : > { %s2999_s12 = sadd.s32 1, %s2116_s17  ;;  %p2404_p12 = por %p122_p9, %p121_p10 }
  0x54   : > { %s2399_s19 = scalar_select %p47_p6, %s2116_s17, %s2999_s12  }
  0x55   : > { %s2402_s0 = scalar_select %p103_p8, %s2092_s11, %s105_s6  }
  0x56   : > { %s3000_s8 = scalar_select %p2404_p12, 1, 0 }
  0x57   : > { %s166_s5 = sand.u32 1, %s2104_s14   ;;  %s1551_s7 = sshll.u32 %s2136_s22, 1 }
  0x58   : > { %s1549_s25 = sshll.u32 %s166_s5, 10  ;;  %s1568_s30 = sshll.u32 %s2132_s21, 8 }
  0x59   : > { %s170_s27 = scalar_lea.vmem [#allocation6], %s1549_s25  ;;  %s177_s2 = sadd.s32 %s1568_s30, %s1551_s7 }
  0x5a   : > { %s180_s3 = sshll.u32 %s170_s27, 4  ;;  %s1553_s20 = sshll.u32 %s177_s2, 7  ;;  %s2411_s3 = int_to_ptr.vmem [resolvable:$true] %s180_s3 }
  0x5b   : > { %p3001_p0 = scmp.lt.s32.totalorder %s2144_s24, 8  ;;  %s2424_s23 = scalar_lea.hbm %s2957_s1, %s1553_s20 }
  0x5c   : > { %s2426_s7 = scalar_lea.sflag [#allocation7], %s166_s5  ;;  %s1948_s25 = scalar_lea.hbm %s2424_s23, 16384 }
  0x5d   : > { %p2417_p13 = pnand %p3001_p0, %p2359_p1  ;;  %p1949_p3 = scmp.ne.s32.totalorder %s2424_s23, %s1948_s25 }
  0x5e   : > { %s1953_s27 = scalar_lea.hbm %s2957_s1, 65536  ;;  %p1954_p6 = scmp.lt.u32.totalorder %s2424_s23, %s2957_s1 }
  0x5f   : > { %p1950_p1 = pneg %p2417_p13  ;;  %p1955_p8 = scmp.lt.u32.totalorder %s1953_s27, %s1948_s25 }
  0x60   : > { %p1957_p9 = scmp.lt.u32.totalorder %s1948_s25, %s2424_s23 }
  0x61   : > { %p1951_p5 = pnand %p1950_p1, %p1949_p3  ;;  %p1956_p10 = por %p1955_p8, %p1954_p6 }
  0x63   : > { %p1952_p2 = pneg %p1951_p5  ;;  %p1958_p0 = por %p1957_p9, %p1956_p10 }
  0x65   : > { %p1959_p12 = pnand %p1958_p0, %p1952_p2 }
  0x67   : > { %1962 = shalt.err (!%p1959_p12)
}
  0x68   : > { %s1963_s5 = scalar_lea.vmem %s2411_s3, 16384  ;;  %s2150_s6 = smov [#allocation6]  }
  0x69   : > { %p1964_p3 = scmp.ne.s32.totalorder %s2411_s3, %s1963_s5  ;;  %s1968_s12 = sshll.u32 %s2150_s6, 4  ;;  %s1969_s12 = int_to_ptr.vmem [resolvable:$false] %s1968_s12 }
  0x6a   : > { %s1970_s26 = scalar_lea.vmem %s1969_s12, 32768  ;;  %p1971_p11 = scmp.lt.s32.totalorder %s2411_s3, %s1969_s12 }
  0x6b   : > { %p1966_p5 = pnand %p1964_p3, %p1950_p1  ;;  %p1972_p6 = scmp.lt.s32.totalorder %s1970_s26, %s1963_s5 }
  0x6d   : > { %p1967_p4 = pneg %p1966_p5  ;;  %p1973_p8 = por %p1972_p6, %p1971_p11 }
  0x6f   : > { %p1974_p10 = pnand %p1973_p8, %p1967_p4 }
  0x71   : > { %1977 = shalt.err (!%p1974_p10)
}
  0x72   : > { %s2151_s25 = smov 256   ;;  %s2152_s30 = smov 16  }
  0x73   : > { %s3003_s27 = smov 512   ;;  %192 = sbr.rel (%p2343_p7) target bundleno = 624 (0x270), region = 28 }
  0x74   : > { %1774 = dma.hbm_to_vmem [thread:$0]  (!%p2417_p13), %s2424_s23, 16384, %s2411_s3, %s2426_s7, %s3003_s27, %s2151_s25, %s2152_s30  }
  0x75   : > { %s3004_s2 = sld [smem:[#allocation17_spill]] (!%p2343_p7)  ;;  %s194_s20 = sand.u32 (!%p2343_p7), 1, %s2112_s16  }
  0x76   : > { %s1555_s6 = sshll.u32 (!%p2343_p7), %s194_s20, 10  ;;  %s195_s5 = scalar_lea.sflag (!%p2343_p7), [#allocation4], %s194_s20 }
  0x77   : > { %s2458_s12 = scalar_lea.vmem (!%p2343_p7), [#allocation3], %s1555_s6 }
  0x7b   : > { %p3005_p11 = scmp.ne.s32.totalorder %s3004_s2, 0 }
  0x7d   : > { %2071 = dma.done.wait (%p3005_p11), %s195_s5, 16384  }
  0x7e   : > { %2073 = vsyncadd (%p3005_p11), %s195_s5, 4294950912  ;;  %s203_s4 = sand.u32 1, %s2100_s13   ;;  %p3006_p7 = scmp.ne.s32.totalorder %s2995_s28, 0 }
  0x7f   : > { %s1556_s26 = sshll.u32 %s203_s4, 10  ;;  %s204_s23 = scalar_lea.sflag [#allocation7], %s203_s4 }
  0x80   : > { %s2465_s3 = scalar_lea.vmem [#allocation6], %s1556_s26 }
  0x81   : > { %2075 = dma.done.wait (%p3006_p7), %s204_s23, 16384  }
  0x82   : > { %2077 = vsyncadd (%p3006_p7), %s204_s23, 4294950912  ;;  %s230_s29 = sand.u32 1, %s2088_s10   ;;  %s3007_s30 = sld [smem:[#allocation12_spill]] }
  0x83   : > { %s1557_s7 = sshll.u32 %s230_s29, 9 }
  0x84   : > { %s2474_s25 = scalar_lea.vmem [#allocation8], %s1557_s7 }
  0x88   : > { %p1558_p4 = scmp.ne.s32.totalorder %s3007_s30, 0 }
  0x89   : > { %v2153_v0 = vmov (!%p1558_p4), 0.0  }
  0x8a   : > { %242 = sbr.rel (%p1558_p4) target bundleno = 170 (0xaa), region = 40  ;;  %243 = vst [vmem:[#allocation2] sm:$0xff] (!%p1558_p4), %v2153_v0  ;;  %244 = vst [vmem:[#allocation2 + $0x8] sm:$0xff] (!%p1558_p4), %v2153_v0 }
  0x8b   : > { %245 = vst [vmem:[#allocation2 + $0x10] sm:$0xff] (!%p1558_p4), %v2153_v0  ;;  %246 = vst [vmem:[#allocation2 + $0x18] sm:$0xff] (!%p1558_p4), %v2153_v0 }
  0x8c   : > { %247 = vst [vmem:[#allocation2 + $0x20] sm:$0xff] (!%p1558_p4), %v2153_v0  ;;  %248 = vst [vmem:[#allocation2 + $0x28] sm:$0xff] (!%p1558_p4), %v2153_v0 }
  0x8d   : > { %249 = vst [vmem:[#allocation2 + $0x30] sm:$0xff] (!%p1558_p4), %v2153_v0  ;;  %250 = vst [vmem:[#allocation2 + $0x38] sm:$0xff] (!%p1558_p4), %v2153_v0 }
  0x8e   : > { %251 = vst [vmem:[#allocation2 + $0x40] sm:$0xff] (!%p1558_p4), %v2153_v0  ;;  %252 = vst [vmem:[#allocation2 + $0x48] sm:$0xff] (!%p1558_p4), %v2153_v0 }
  0x8f   : > { %253 = vst [vmem:[#allocation2 + $0x50] sm:$0xff] (!%p1558_p4), %v2153_v0  ;;  %254 = vst [vmem:[#allocation2 + $0x58] sm:$0xff] (!%p1558_p4), %v2153_v0 }
  0x90   : > { %255 = vst [vmem:[#allocation2 + $0x60] sm:$0xff] (!%p1558_p4), %v2153_v0  ;;  %256 = vst [vmem:[#allocation2 + $0x68] sm:$0xff] (!%p1558_p4), %v2153_v0 }
  0x91   : > { %257 = vst [vmem:[#allocation2 + $0x70] sm:$0xff] %v2153_v0  ;;  %258 = vst [vmem:[#allocation2 + $0x78] sm:$0xff] %v2153_v0 }
  0x92   : > { %259 = vst [vmem:[#allocation2 + $0x80] sm:$0xff] %v2153_v0  ;;  %260 = vst [vmem:[#allocation2 + $0x88] sm:$0xff] %v2153_v0 }
  0x93   : > { %261 = vst [vmem:[#allocation2 + $0x90] sm:$0xff] %v2153_v0  ;;  %262 = vst [vmem:[#allocation2 + $0x98] sm:$0xff] %v2153_v0 }
  0x94   : > { %263 = vst [vmem:[#allocation2 + $0xa0] sm:$0xff] %v2153_v0  ;;  %264 = vst [vmem:[#allocation2 + $0xa8] sm:$0xff] %v2153_v0 }
  0x95   : > { %265 = vst [vmem:[#allocation2 + $0xb0] sm:$0xff] %v2153_v0  ;;  %266 = vst [vmem:[#allocation2 + $0xb8] sm:$0xff] %v2153_v0 }
  0x96   : > { %267 = vst [vmem:[#allocation2 + $0xc0] sm:$0xff] %v2153_v0  ;;  %268 = vst [vmem:[#allocation2 + $0xc8] sm:$0xff] %v2153_v0 }
  0x97   : > { %269 = vst [vmem:[#allocation2 + $0xd0] sm:$0xff] %v2153_v0  ;;  %270 = vst [vmem:[#allocation2 + $0xd8] sm:$0xff] %v2153_v0 }
  0x98   : > { %271 = vst [vmem:[#allocation2 + $0xe0] sm:$0xff] %v2153_v0  ;;  %272 = vst [vmem:[#allocation2 + $0xe8] sm:$0xff] %v2153_v0 }
  0x99   : > { %273 = vst [vmem:[#allocation2 + $0xf0] sm:$0xff] %v2153_v0  ;;  %274 = vst [vmem:[#allocation2 + $0xf8] sm:$0xff] %v2153_v0 }
  0x9a   : > { %275 = vst [vmem:[#allocation2 + $0x100] sm:$0xff] %v2153_v0  ;;  %276 = vst [vmem:[#allocation2 + $0x108] sm:$0xff] %v2153_v0 }
  0x9b   : > { %277 = vst [vmem:[#allocation2 + $0x110] sm:$0xff] %v2153_v0  ;;  %278 = vst [vmem:[#allocation2 + $0x118] sm:$0xff] %v2153_v0 }
  0x9c   : > { %279 = vst [vmem:[#allocation2 + $0x120] sm:$0xff] %v2153_v0  ;;  %280 = vst [vmem:[#allocation2 + $0x128] sm:$0xff] %v2153_v0 }
  0x9d   : > { %281 = vst [vmem:[#allocation2 + $0x130] sm:$0xff] %v2153_v0  ;;  %282 = vst [vmem:[#allocation2 + $0x138] sm:$0xff] %v2153_v0 }
  0x9e   : > { %283 = vst [vmem:[#allocation2 + $0x140] sm:$0xff] %v2153_v0  ;;  %284 = vst [vmem:[#allocation2 + $0x148] sm:$0xff] %v2153_v0 }
  0x9f   : > { %285 = vst [vmem:[#allocation2 + $0x150] sm:$0xff] %v2153_v0  ;;  %286 = vst [vmem:[#allocation2 + $0x158] sm:$0xff] %v2153_v0 }
  0xa0   : > { %287 = vst [vmem:[#allocation2 + $0x160] sm:$0xff] %v2153_v0  ;;  %288 = vst [vmem:[#allocation2 + $0x168] sm:$0xff] %v2153_v0 }
  0xa1   : > { %289 = vst [vmem:[#allocation2 + $0x170] sm:$0xff] %v2153_v0  ;;  %290 = vst [vmem:[#allocation2 + $0x178] sm:$0xff] %v2153_v0 }
  0xa2   : > { %291 = vst [vmem:[#allocation2 + $0x180] sm:$0xff] %v2153_v0  ;;  %292 = vst [vmem:[#allocation2 + $0x188] sm:$0xff] %v2153_v0 }
  0xa3   : > { %293 = vst [vmem:[#allocation2 + $0x190] sm:$0xff] %v2153_v0  ;;  %294 = vst [vmem:[#allocation2 + $0x198] sm:$0xff] %v2153_v0 }
  0xa4   : > { %295 = vst [vmem:[#allocation2 + $0x1a0] sm:$0xff] %v2153_v0  ;;  %296 = vst [vmem:[#allocation2 + $0x1a8] sm:$0xff] %v2153_v0 }
  0xa5   : > { %297 = vst [vmem:[#allocation2 + $0x1b0] sm:$0xff] %v2153_v0  ;;  %298 = vst [vmem:[#allocation2 + $0x1b8] sm:$0xff] %v2153_v0 }
  0xa6   : > { %299 = vst [vmem:[#allocation2 + $0x1c0] sm:$0xff] %v2153_v0  ;;  %300 = vst [vmem:[#allocation2 + $0x1c8] sm:$0xff] %v2153_v0 }
  0xa7   : > { %301 = vst [vmem:[#allocation2 + $0x1d0] sm:$0xff] %v2153_v0  ;;  %302 = vst [vmem:[#allocation2 + $0x1d8] sm:$0xff] %v2153_v0 }
  0xa8   : > { %303 = vst [vmem:[#allocation2 + $0x1e0] sm:$0xff] %v2153_v0  ;;  %304 = vst [vmem:[#allocation2 + $0x1e8] sm:$0xff] %v2153_v0 }
  0xa9   : > { %305 = vst [vmem:[#allocation2 + $0x1f0] sm:$0xff] %v2153_v0  ;;  %306 = vst [vmem:[#allocation2 + $0x1f8] sm:$0xff] %v2153_v0 }
  0xaa PF: > { %v500_v1 = vld [vmem:[%s2465_s3 + $0x8] sm:$0xff]  ;;  %v502_v2 = vld [vmem:[%s2465_s3 + $0x18] sm:$0xff]  ;;  %v499_v6 = vld [vmem:[%s2465_s3] sm:$0xff]  ;;  %s3008_s28 = sld [smem:[#allocation12_spill]] }
  0xab   : > { %v564_v3 = vld [vmem:[%s2465_s3 + $0x208] sm:$0xff]  ;;  %v1570_v4 = vpack.c.bf16 %v502_v2, %v500_v1  ;;  %v566_v5 = vld [vmem:[%s2465_s3 + $0x218] sm:$0xff]  ;;  %v501_v7 = vld [vmem:[%s2465_s3 + $0x10] sm:$0xff] }
  0xac   : > { %v1634_v8 = vpack.c.bf16 %v566_v5, %v564_v3  ;;  %v1572_v9 = vpack.c.bf16 %v501_v7, %v499_v6  ;;  %v563_v10 = vld [vmem:[%s2465_s3 + $0x200] sm:$0xff]  ;;  %v565_v11 = vld [vmem:[%s2465_s3 + $0x210] sm:$0xff]  ;;  %v504_v12 = vld [vmem:[%s2465_s3 + $0x28] sm:$0xff] }
  0xad   : > { %1571 = vmatprep.subr.bf16.mxu1 %v1570_v4  ;;  %v1636_v13 = vpack.c.bf16 %v565_v11, %v563_v10  ;;  %v506_v14 = vld [vmem:[%s2465_s3 + $0x38] sm:$0xff]  ;;  %v568_v15 = vld [vmem:[%s2465_s3 + $0x228] sm:$0xff]  ;;  %v503_v19 = vld [vmem:[%s2465_s3 + $0x20] sm:$0xff] }
  0xae   : > { %v570_v16 = vld [vmem:[%s2465_s3 + $0x238] sm:$0xff]  ;;  %1635 = vmatprep.subr.bf16.mxu0 %v1634_v8  ;;  %1573 = vmatpush1.bf16.msra.mxu1 %v1572_v9  ;;  %v1574_v17 = vpack.c.bf16 %v506_v14, %v504_v12  ;;  %v505_v20 = vld [vmem:[%s2465_s3 + $0x30] sm:$0xff]  ;;  %v567_v21 = vld [vmem:[%s2465_s3 + $0x220] sm:$0xff] }
  0xaf   : > { %v1638_v18 = vpack.c.bf16 %v570_v16, %v568_v15  ;;  %1637 = vmatpush1.bf16.msra.mxu0 %v1636_v13  ;;  %v1576_v22 = vpack.c.bf16 %v505_v20, %v503_v19  ;;  %v569_v23 = vld [vmem:[%s2465_s3 + $0x230] sm:$0xff]  ;;  %v508_v24 = vld [vmem:[%s2465_s3 + $0x48] sm:$0xff]  ;;  %v510_v25 = vld [vmem:[%s2465_s3 + $0x58] sm:$0xff] }
  0xb0   : > { %1575 = vmatprep.subr.bf16.mxu1 %v1574_v17  ;;  %v1640_v26 = vpack.c.bf16 %v569_v23, %v567_v21  ;;  %v1578_v27 = vpack.c.bf16 %v510_v25, %v508_v24  ;;  %v572_v28 = vld [vmem:[%s2465_s3 + $0x248] sm:$0xff]  ;;  %v574_v29 = vld [vmem:[%s2465_s3 + $0x258] sm:$0xff]  ;;  %v507_v30 = vld [vmem:[%s2465_s3 + $0x40] sm:$0xff]  ;;  %p1559_p12 = scmp.ne.s32.totalorder %s3008_s28, 1 }
  0xb1   : > { %1639 = vmatprep.subr.bf16.mxu0 %v1638_v18  ;;  %v1642_v31 = vpack.c.bf16 %v574_v29, %v572_v28  ;;  %v509_v32 = vld [vmem:[%s2465_s3 + $0x50] sm:$0xff]  ;;  %v571_v33 = vld [vmem:[%s2465_s3 + $0x240] sm:$0xff]  ;;  %v512_v36 = vld [vmem:[%s2465_s3 + $0x68] sm:$0xff] }
  0xb2   : > { %v573_v34 = vld [vmem:[%s2465_s3 + $0x250] sm:$0xff]  ;;  %1577 = vmatpush1.bf16.msra.mxu1 %v1576_v22  ;;  %v1580_v35 = vpack.c.bf16 %v509_v32, %v507_v30  ;;  %v514_v37 = vld [vmem:[%s2465_s3 + $0x78] sm:$0xff]  ;;  %v576_v38 = vld [vmem:[%s2465_s3 + $0x268] sm:$0xff] }
  0xb3   : > { %1641 = vmatpush1.bf16.msra.mxu0 %v1640_v26  ;;  %1579 = vmatprep.subr.bf16.mxu1 %v1578_v27  ;;  %v1644_v39 = vpack.c.bf16 %v573_v34, %v571_v33  ;;  %v1582_v40 = vpack.c.bf16 %v514_v37, %v512_v36  ;;  %v578_v41 = vld [vmem:[%s2465_s3 + $0x278] sm:$0xff]  ;;  %v511_v42 = vld [vmem:[%s2465_s3 + $0x60] sm:$0xff]  ;;  %v513_v43 = vld [vmem:[%s2465_s3 + $0x70] sm:$0xff] }
  0xb4   : > { %1643 = vmatprep.subr.bf16.mxu0 %v1642_v31  ;;  %v1646_v44 = vpack.c.bf16 %v578_v41, %v576_v38  ;;  %v575_v45 = vld [vmem:[%s2465_s3 + $0x260] sm:$0xff]  ;;  %v577_v46 = vld [vmem:[%s2465_s3 + $0x270] sm:$0xff]  ;;  %v516_v47 = vld [vmem:[%s2465_s3 + $0x88] sm:$0xff]  ;;  %v1584_v51 = vpack.c.bf16 %v513_v43, %v511_v42 }
  0xb5   : > { %v518_v48 = vld [vmem:[%s2465_s3 + $0x98] sm:$0xff]  ;;  %v580_v49 = vld [vmem:[%s2465_s3 + $0x288] sm:$0xff]  ;;  %v1648_v52 = vpack.c.bf16 %v577_v46, %v575_v45  ;;  %v515_v54 = vld [vmem:[%s2465_s3 + $0x80] sm:$0xff] }
  0xb6   : > { %v582_v50 = vld [vmem:[%s2465_s3 + $0x298] sm:$0xff]  ;;  %1581 = vmatpush1.bf16.msra.mxu1 %v1580_v35  ;;  %v1586_v53 = vpack.c.bf16 %v518_v48, %v516_v47  ;;  %v517_v55 = vld [vmem:[%s2465_s3 + $0x90] sm:$0xff]  ;;  %v579_v56 = vld [vmem:[%s2465_s3 + $0x280] sm:$0xff] }
  0xb7   : > { %1645 = vmatpush1.bf16.msra.mxu0 %v1644_v39  ;;  %1583 = vmatprep.subr.bf16.mxu1 %v1582_v40  ;;  %v1650_v57 = vpack.c.bf16 %v582_v50, %v580_v49  ;;  %v581_v58 = vld [vmem:[%s2465_s3 + $0x290] sm:$0xff]  ;;  %v520_v59 = vld [vmem:[%s2465_s3 + $0xa8] sm:$0xff]  ;;  %v522_v60 = vld [vmem:[%s2465_s3 + $0xb8] sm:$0xff]  ;;  %v1588_v63 = vpack.c.bf16 %v517_v55, %v515_v54 }
  0xb8   : > { %1647 = vmatprep.subr.bf16.mxu0 %v1646_v44  ;;  %v584_v61 = vld [vmem:[%s2465_s3 + $0x2a8] sm:$0xff]  ;;  %v586_v62 = vld [vmem:[%s2465_s3 + $0x2b8] sm:$0xff]  ;;  %v1652_v0 = vpack.c.bf16 %v581_v58, %v579_v56  ;;  %v1590_v1 = vpack.c.bf16 %v522_v60, %v520_v59  ;;  %v519_v2 = vld [vmem:[%s2465_s3 + $0xa0] sm:$0xff] }
  0xb9   : > { %v521_v3 = vld [vmem:[%s2465_s3 + $0xb0] sm:$0xff]  ;;  %v583_v4 = vld [vmem:[%s2465_s3 + $0x2a0] sm:$0xff]  ;;  %v1654_v5 = vpack.c.bf16 %v586_v62, %v584_v61  ;;  %v524_v7 = vld [vmem:[%s2465_s3 + $0xc8] sm:$0xff] }
  0xba   : > { %1585 = vmatpush1.bf16.msra.mxu1 %v1584_v51  ;;  %v585_v6 = vld [vmem:[%s2465_s3 + $0x2b0] sm:$0xff]  ;;  %v526_v8 = vld [vmem:[%s2465_s3 + $0xd8] sm:$0xff]  ;;  %v588_v9 = vld [vmem:[%s2465_s3 + $0x2c8] sm:$0xff]  ;;  %v1592_v11 = vpack.c.bf16 %v521_v3, %v519_v2 }
  0xbb   : > { %1649 = vmatpush1.bf16.msra.mxu0 %v1648_v52  ;;  %1587 = vmatprep.subr.bf16.mxu1 %v1586_v53  ;;  %v590_v10 = vld [vmem:[%s2465_s3 + $0x2d8] sm:$0xff]  ;;  %v1656_v12 = vpack.c.bf16 %v585_v6, %v583_v4  ;;  %v1594_v13 = vpack.c.bf16 %v526_v8, %v524_v7  ;;  %v523_v14 = vld [vmem:[%s2465_s3 + $0xc0] sm:$0xff]  ;;  %v525_v15 = vld [vmem:[%s2465_s3 + $0xd0] sm:$0xff] }
  0xbc   : > { %1651 = vmatprep.subr.bf16.mxu0 %v1650_v57  ;;  %v587_v16 = vld [vmem:[%s2465_s3 + $0x2c0] sm:$0xff]  ;;  %v1658_v17 = vpack.c.bf16 %v590_v10, %v588_v9  ;;  %v589_v18 = vld [vmem:[%s2465_s3 + $0x2d0] sm:$0xff]  ;;  %v528_v19 = vld [vmem:[%s2465_s3 + $0xe8] sm:$0xff]  ;;  %v1596_v23 = vpack.c.bf16 %v525_v15, %v523_v14 }
  0xbd   : > { %v530_v20 = vld [vmem:[%s2465_s3 + $0xf8] sm:$0xff]  ;;  %v592_v21 = vld [vmem:[%s2465_s3 + $0x2e8] sm:$0xff]  ;;  %v1660_v24 = vpack.c.bf16 %v589_v18, %v587_v16  ;;  %v527_v26 = vld [vmem:[%s2465_s3 + $0xe0] sm:$0xff] }
  0xbe   : > { %1589 = vmatpush1.bf16.msra.mxu1 %v1588_v63  ;;  %v594_v22 = vld [vmem:[%s2465_s3 + $0x2f8] sm:$0xff]  ;;  %v1598_v25 = vpack.c.bf16 %v530_v20, %v528_v19  ;;  %v529_v27 = vld [vmem:[%s2465_s3 + $0xf0] sm:$0xff]  ;;  %v591_v28 = vld [vmem:[%s2465_s3 + $0x2e0] sm:$0xff] }
  0xbf   : > { %1653 = vmatpush1.bf16.msra.mxu0 %v1652_v0  ;;  %1591 = vmatprep.subr.bf16.mxu1 %v1590_v1  ;;  %v1662_v29 = vpack.c.bf16 %v594_v22, %v592_v21  ;;  %v593_v30 = vld [vmem:[%s2465_s3 + $0x2f0] sm:$0xff]  ;;  %v532_v31 = vld [vmem:[%s2465_s3 + $0x108] sm:$0xff]  ;;  %v534_v32 = vld [vmem:[%s2465_s3 + $0x118] sm:$0xff]  ;;  %v1600_v35 = vpack.c.bf16 %v529_v27, %v527_v26 }
  0xc0   : > { %1655 = vmatprep.subr.bf16.mxu0 %v1654_v5  ;;  %v596_v33 = vld [vmem:[%s2465_s3 + $0x308] sm:$0xff]  ;;  %v598_v34 = vld [vmem:[%s2465_s3 + $0x318] sm:$0xff]  ;;  %v1664_v36 = vpack.c.bf16 %v593_v30, %v591_v28  ;;  %v1602_v37 = vpack.c.bf16 %v534_v32, %v532_v31  ;;  %v531_v38 = vld [vmem:[%s2465_s3 + $0x100] sm:$0xff] }
  0xc1   : > { %v533_v39 = vld [vmem:[%s2465_s3 + $0x110] sm:$0xff]  ;;  %v595_v40 = vld [vmem:[%s2465_s3 + $0x300] sm:$0xff]  ;;  %v1666_v41 = vpack.c.bf16 %v598_v34, %v596_v33  ;;  %v536_v43 = vld [vmem:[%s2465_s3 + $0x128] sm:$0xff] }
  0xc2   : > { %1593 = vmatpush1.bf16.msra.mxu1 %v1592_v11  ;;  %v597_v42 = vld [vmem:[%s2465_s3 + $0x310] sm:$0xff]  ;;  %v538_v44 = vld [vmem:[%s2465_s3 + $0x138] sm:$0xff]  ;;  %v600_v45 = vld [vmem:[%s2465_s3 + $0x328] sm:$0xff]  ;;  %v1604_v47 = vpack.c.bf16 %v533_v39, %v531_v38 }
  0xc3   : > { %1657 = vmatpush1.bf16.msra.mxu0 %v1656_v12  ;;  %1595 = vmatprep.subr.bf16.mxu1 %v1594_v13  ;;  %v602_v46 = vld [vmem:[%s2465_s3 + $0x338] sm:$0xff]  ;;  %v1668_v48 = vpack.c.bf16 %v597_v42, %v595_v40  ;;  %v1606_v49 = vpack.c.bf16 %v538_v44, %v536_v43  ;;  %v535_v50 = vld [vmem:[%s2465_s3 + $0x120] sm:$0xff]  ;;  %v537_v51 = vld [vmem:[%s2465_s3 + $0x130] sm:$0xff] }
  0xc4   : > { %1659 = vmatprep.subr.bf16.mxu0 %v1658_v17  ;;  %v599_v52 = vld [vmem:[%s2465_s3 + $0x320] sm:$0xff]  ;;  %v1670_v53 = vpack.c.bf16 %v602_v46, %v600_v45  ;;  %v601_v54 = vld [vmem:[%s2465_s3 + $0x330] sm:$0xff]  ;;  %v540_v55 = vld [vmem:[%s2465_s3 + $0x148] sm:$0xff]  ;;  %v1608_v59 = vpack.c.bf16 %v537_v51, %v535_v50 }
  0xc5   : > { %v542_v56 = vld [vmem:[%s2465_s3 + $0x158] sm:$0xff]  ;;  %v604_v57 = vld [vmem:[%s2465_s3 + $0x348] sm:$0xff]  ;;  %v1672_v60 = vpack.c.bf16 %v601_v54, %v599_v52  ;;  %v539_v62 = vld [vmem:[%s2465_s3 + $0x140] sm:$0xff] }
  0xc6   : > { %1597 = vmatpush1.bf16.msra.mxu1 %v1596_v23  ;;  %v606_v58 = vld [vmem:[%s2465_s3 + $0x358] sm:$0xff]  ;;  %v1610_v61 = vpack.c.bf16 %v542_v56, %v540_v55  ;;  %v541_v63 = vld [vmem:[%s2465_s3 + $0x150] sm:$0xff]  ;;  %v603_v0 = vld [vmem:[%s2465_s3 + $0x340] sm:$0xff] }
  0xc7   : > { %1661 = vmatpush1.bf16.msra.mxu0 %v1660_v24  ;;  %1599 = vmatprep.subr.bf16.mxu1 %v1598_v25  ;;  %v1674_v1 = vpack.c.bf16 %v606_v58, %v604_v57  ;;  %v605_v2 = vld [vmem:[%s2465_s3 + $0x350] sm:$0xff]  ;;  %v544_v3 = vld [vmem:[%s2465_s3 + $0x168] sm:$0xff]  ;;  %v546_v4 = vld [vmem:[%s2465_s3 + $0x178] sm:$0xff]  ;;  %v1612_v7 = vpack.c.bf16 %v541_v63, %v539_v62 }
  0xc8   : > { %1663 = vmatprep.subr.bf16.mxu0 %v1662_v29  ;;  %v608_v5 = vld [vmem:[%s2465_s3 + $0x368] sm:$0xff]  ;;  %v610_v6 = vld [vmem:[%s2465_s3 + $0x378] sm:$0xff]  ;;  %v543_v8 = vld [vmem:[%s2465_s3 + $0x160] sm:$0xff]  ;;  %v1676_v9 = vpack.c.bf16 %v605_v2, %v603_v0  ;;  %v1614_v10 = vpack.c.bf16 %v546_v4, %v544_v3 }
  0xc9   : > { %v545_v11 = vld [vmem:[%s2465_s3 + $0x170] sm:$0xff]  ;;  %v607_v12 = vld [vmem:[%s2465_s3 + $0x360] sm:$0xff]  ;;  %v1678_v14 = vpack.c.bf16 %v610_v6, %v608_v5  ;;  %v548_v15 = vld [vmem:[%s2465_s3 + $0x188] sm:$0xff] }
  0xca   : > { %1601 = vmatpush1.bf16.msra.mxu1 %v1600_v35  ;;  %v609_v13 = vld [vmem:[%s2465_s3 + $0x370] sm:$0xff]  ;;  %v550_v16 = vld [vmem:[%s2465_s3 + $0x198] sm:$0xff]  ;;  %v372_v17 = vld [vmem:[%s2458_s12 + $0x8] sm:$0xff]  ;;  %v1616_v21 = vpack.c.bf16 %v545_v11, %v543_v8 }
  0xcb   : > { %1665 = vmatpush1.bf16.msra.mxu0 %v1664_v36  ;;  %1603 = vmatprep.subr.bf16.mxu1 %v1602_v37  ;;  %v612_v18 = vld [vmem:[%s2465_s3 + $0x388] sm:$0xff]  ;;  %v614_v19 = vld [vmem:[%s2465_s3 + $0x398] sm:$0xff]  ;;  %v1680_v22 = vpack.c.bf16 %v609_v13, %v607_v12  ;;  %v1618_v23 = vpack.c.bf16 %v550_v16, %v548_v15  ;;  %v547_v24 = vld [vmem:[%s2465_s3 + $0x180] sm:$0xff] }
  0xcc   : > { %1667 = vmatprep.subr.bf16.mxu0 %v1666_v41  ;;  %691 = vmatprep.mubr.f32.mxu1 %v372_v17  ;;  %v374_v20 = vld [vmem:[%s2458_s12 + $0x18] sm:$0xff]  ;;  %v549_v25 = vld [vmem:[%s2465_s3 + $0x190] sm:$0xff]  ;;  %v611_v26 = vld [vmem:[%s2465_s3 + $0x380] sm:$0xff]  ;;  %v1682_v27 = vpack.c.bf16 %v614_v19, %v612_v18 }
  0xcd   : > { %948 = vmatprep.mubr.f32.mxu0 %v374_v20  ;;  %v613_v28 = vld [vmem:[%s2465_s3 + $0x390] sm:$0xff]  ;;  %v552_v29 = vld [vmem:[%s2465_s3 + $0x1a8] sm:$0xff]  ;;  %v554_v30 = vld [vmem:[%s2465_s3 + $0x1b8] sm:$0xff]  ;;  %v1620_v33 = vpack.c.bf16 %v549_v25, %v547_v24 }
  0xce   : > { %1605 = vmatpush1.bf16.msra.mxu1 %v1604_v47  ;;  %v616_v31 = vld [vmem:[%s2465_s3 + $0x3a8] sm:$0xff]  ;;  %v618_v32 = vld [vmem:[%s2465_s3 + $0x3b8] sm:$0xff]  ;;  %v1684_v34 = vpack.c.bf16 %v613_v28, %v611_v26  ;;  %v1622_v35 = vpack.c.bf16 %v554_v30, %v552_v29  ;;  %v551_v36 = vld [vmem:[%s2465_s3 + $0x1a0] sm:$0xff] }
  0xcf   : > { %1669 = vmatpush1.bf16.msra.mxu0 %v1668_v48  ;;  %1607 = vmatprep.subr.bf16.mxu1 %v1606_v49  ;;  %v553_v37 = vld [vmem:[%s2465_s3 + $0x1b0] sm:$0xff]  ;;  %v615_v38 = vld [vmem:[%s2465_s3 + $0x3a0] sm:$0xff]  ;;  %v1686_v39 = vpack.c.bf16 %v618_v32, %v616_v31  ;;  %v556_v41 = vld [vmem:[%s2465_s3 + $0x1c8] sm:$0xff] }
  0xd0   : > { %1671 = vmatprep.subr.bf16.mxu0 %v1670_v53  ;;  %v617_v40 = vld [vmem:[%s2465_s3 + $0x3b0] sm:$0xff]  ;;  %v558_v42 = vld [vmem:[%s2465_s3 + $0x1d8] sm:$0xff]  ;;  %v620_v43 = vld [vmem:[%s2465_s3 + $0x3c8] sm:$0xff]  ;;  %v1624_v45 = vpack.c.bf16 %v553_v37, %v551_v36 }
  0xd1   : > { %v622_v44 = vld [vmem:[%s2465_s3 + $0x3d8] sm:$0xff]  ;;  %v1688_v46 = vpack.c.bf16 %v617_v40, %v615_v38  ;;  %v1626_v47 = vpack.c.bf16 %v558_v42, %v556_v41  ;;  %v555_v48 = vld [vmem:[%s2465_s3 + $0x1c0] sm:$0xff]  ;;  %v557_v49 = vld [vmem:[%s2465_s3 + $0x1d0] sm:$0xff] }
  0xd2   : > { %1609 = vmatpush1.bf16.msra.mxu1 %v1608_v59  ;;  %v619_v50 = vld [vmem:[%s2465_s3 + $0x3c0] sm:$0xff]  ;;  %v1690_v51 = vpack.c.bf16 %v622_v44, %v620_v43  ;;  %v621_v52 = vld [vmem:[%s2465_s3 + $0x3d0] sm:$0xff]  ;;  %v560_v53 = vld [vmem:[%s2465_s3 + $0x1e8] sm:$0xff]  ;;  %v1628_v57 = vpack.c.bf16 %v557_v49, %v555_v48 }
  0xd3   : > { %1673 = vmatpush1.bf16.msra.mxu0 %v1672_v60  ;;  %1611 = vmatprep.subr.bf16.mxu1 %v1610_v61  ;;  %v562_v54 = vld [vmem:[%s2465_s3 + $0x1f8] sm:$0xff]  ;;  %v624_v55 = vld [vmem:[%s2465_s3 + $0x3e8] sm:$0xff]  ;;  %v1692_v58 = vpack.c.bf16 %v621_v52, %v619_v50  ;;  %v559_v60 = vld [vmem:[%s2465_s3 + $0x1e0] sm:$0xff] }
  0xd4   : > { %1675 = vmatprep.subr.bf16.mxu0 %v1674_v1  ;;  %v626_v56 = vld [vmem:[%s2465_s3 + $0x3f8] sm:$0xff]  ;;  %v1630_v59 = vpack.c.bf16 %v562_v54, %v560_v53  ;;  %v561_v61 = vld [vmem:[%s2465_s3 + $0x1f0] sm:$0xff]  ;;  %v623_v63 = vld [vmem:[%s2465_s3 + $0x3e0] sm:$0xff] }
  0xd5   : > { %v1694_v62 = vpack.c.bf16 %v626_v56, %v624_v55  ;;  %v625_v0 = vld [vmem:[%s2465_s3 + $0x3f0] sm:$0xff]  ;;  %v1632_v1 = vpack.c.bf16 %v561_v61, %v559_v60  ;;  %v371_v3 = vld [vmem:[%s2458_s12] sm:$0xff]  ;;  %v376_v5 = vld [vmem:[%s2458_s12 + $0x28] sm:$0xff] }
  0xd6   : > { %1613 = vmatpush1.bf16.msra.mxu1 %v1612_v7  ;;  %v1696_v2 = vpack.c.bf16 %v625_v0, %v623_v63  ;;  %v373_v4 = vld [vmem:[%s2458_s12 + $0x10] sm:$0xff]  ;;  %v378_v6 = vld [vmem:[%s2458_s12 + $0x38] sm:$0xff]  ;;  %v375_v7 = vld [vmem:[%s2458_s12 + $0x20] sm:$0xff] }
  0xd7   : > { %1677 = vmatpush1.bf16.msra.mxu0 %v1676_v9  ;;  %1615 = vmatprep.subr.bf16.mxu1 %v1614_v10  ;;  %v377_v8 = vld [vmem:[%s2458_s12 + $0x30] sm:$0xff]  ;;  %v380_v9 = vld [vmem:[%s2458_s12 + $0x48] sm:$0xff]  ;;  %v382_v10 = vld [vmem:[%s2458_s12 + $0x58] sm:$0xff] }
  0xd8   : > { %1679 = vmatprep.subr.bf16.mxu0 %v1678_v14  ;;  %v379_v11 = vld [vmem:[%s2458_s12 + $0x40] sm:$0xff]  ;;  %v381_v12 = vld [vmem:[%s2458_s12 + $0x50] sm:$0xff]  ;;  %v384_v13 = vld [vmem:[%s2458_s12 + $0x68] sm:$0xff] }
  0xd9   : > { %v386_v14 = vld [vmem:[%s2458_s12 + $0x78] sm:$0xff]  ;;  %v383_v15 = vld [vmem:[%s2458_s12 + $0x60] sm:$0xff]  ;;  %v385_v16 = vld [vmem:[%s2458_s12 + $0x70] sm:$0xff] }
  0xda   : > { %1617 = vmatpush1.bf16.msra.mxu1 %v1616_v21  ;;  %v388_v17 = vld [vmem:[%s2458_s12 + $0x88] sm:$0xff]  ;;  %v390_v18 = vld [vmem:[%s2458_s12 + $0x98] sm:$0xff]  ;;  %v387_v19 = vld [vmem:[%s2458_s12 + $0x80] sm:$0xff] }
  0xdb   : > { %1681 = vmatpush1.bf16.msra.mxu0 %v1680_v22  ;;  %1619 = vmatprep.subr.bf16.mxu1 %v1618_v23  ;;  %v389_v20 = vld [vmem:[%s2458_s12 + $0x90] sm:$0xff]  ;;  %v392_v21 = vld [vmem:[%s2458_s12 + $0xa8] sm:$0xff]  ;;  %v394_v22 = vld [vmem:[%s2458_s12 + $0xb8] sm:$0xff] }
  0xdc   : > { %1683 = vmatprep.subr.bf16.mxu0 %v1682_v27  ;;  %v391_v23 = vld [vmem:[%s2458_s12 + $0xa0] sm:$0xff]  ;;  %v393_v24 = vld [vmem:[%s2458_s12 + $0xb0] sm:$0xff]  ;;  %v396_v25 = vld [vmem:[%s2458_s12 + $0xc8] sm:$0xff] }
  0xdd   : > { %v398_v26 = vld [vmem:[%s2458_s12 + $0xd8] sm:$0xff]  ;;  %v395_v27 = vld [vmem:[%s2458_s12 + $0xc0] sm:$0xff]  ;;  %v397_v28 = vld [vmem:[%s2458_s12 + $0xd0] sm:$0xff] }
  0xde   : > { %1621 = vmatpush1.bf16.msra.mxu1 %v1620_v33  ;;  %v400_v29 = vld [vmem:[%s2458_s12 + $0xe8] sm:$0xff]  ;;  %v402_v30 = vld [vmem:[%s2458_s12 + $0xf8] sm:$0xff]  ;;  %v399_v31 = vld [vmem:[%s2458_s12 + $0xe0] sm:$0xff] }
  0xdf   : > { %1685 = vmatpush1.bf16.msra.mxu0 %v1684_v34  ;;  %1623 = vmatprep.subr.bf16.mxu1 %v1622_v35  ;;  %v401_v32 = vld [vmem:[%s2458_s12 + $0xf0] sm:$0xff]  ;;  %v404_v33 = vld [vmem:[%s2458_s12 + $0x108] sm:$0xff]  ;;  %v406_v34 = vld [vmem:[%s2458_s12 + $0x118] sm:$0xff] }
  0xe0   : > { %1687 = vmatprep.subr.bf16.mxu0 %v1686_v39  ;;  %v403_v35 = vld [vmem:[%s2458_s12 + $0x100] sm:$0xff]  ;;  %v405_v36 = vld [vmem:[%s2458_s12 + $0x110] sm:$0xff]  ;;  %v408_v37 = vld [vmem:[%s2458_s12 + $0x128] sm:$0xff] }
  0xe1   : > { %v410_v38 = vld [vmem:[%s2458_s12 + $0x138] sm:$0xff]  ;;  %v407_v39 = vld [vmem:[%s2458_s12 + $0x120] sm:$0xff]  ;;  %v409_v40 = vld [vmem:[%s2458_s12 + $0x130] sm:$0xff] }
  0xe2   : > { %1625 = vmatpush1.bf16.msra.mxu1 %v1624_v45  ;;  %v412_v41 = vld [vmem:[%s2458_s12 + $0x148] sm:$0xff]  ;;  %v414_v42 = vld [vmem:[%s2458_s12 + $0x158] sm:$0xff]  ;;  %v411_v43 = vld [vmem:[%s2458_s12 + $0x140] sm:$0xff] }
  0xe3   : > { %1689 = vmatpush1.bf16.msra.mxu0 %v1688_v46  ;;  %1627 = vmatprep.subr.bf16.mxu1 %v1626_v47  ;;  %v413_v44 = vld [vmem:[%s2458_s12 + $0x150] sm:$0xff]  ;;  %v416_v45 = vld [vmem:[%s2458_s12 + $0x168] sm:$0xff]  ;;  %v418_v46 = vld [vmem:[%s2458_s12 + $0x178] sm:$0xff] }
  0xe4   : > { %1691 = vmatprep.subr.bf16.mxu0 %v1690_v51  ;;  %v415_v47 = vld [vmem:[%s2458_s12 + $0x160] sm:$0xff]  ;;  %v417_v48 = vld [vmem:[%s2458_s12 + $0x170] sm:$0xff]  ;;  %v420_v49 = vld [vmem:[%s2458_s12 + $0x188] sm:$0xff] }
  0xe5   : > { %v422_v50 = vld [vmem:[%s2458_s12 + $0x198] sm:$0xff]  ;;  %v419_v51 = vld [vmem:[%s2458_s12 + $0x180] sm:$0xff]  ;;  %v421_v52 = vld [vmem:[%s2458_s12 + $0x190] sm:$0xff] }
  0xe6   : > { %1629 = vmatpush1.bf16.msra.mxu1 %v1628_v57  ;;  %v424_v53 = vld [vmem:[%s2458_s12 + $0x1a8] sm:$0xff]  ;;  %v426_v54 = vld [vmem:[%s2458_s12 + $0x1b8] sm:$0xff]  ;;  %v423_v55 = vld [vmem:[%s2458_s12 + $0x1a0] sm:$0xff] }
  0xe7   : > { %1693 = vmatpush1.bf16.msra.mxu0 %v1692_v58  ;;  %1631 = vmatprep.subr.bf16.mxu1 %v1630_v59  ;;  %v425_v56 = vld [vmem:[%s2458_s12 + $0x1b0] sm:$0xff]  ;;  %v428_v57 = vld [vmem:[%s2458_s12 + $0x1c8] sm:$0xff]  ;;  %v430_v58 = vld [vmem:[%s2458_s12 + $0x1d8] sm:$0xff] }
  0xe8   : > { %1695 = vmatprep.subr.bf16.mxu0 %v1694_v62  ;;  %v427_v59 = vld [vmem:[%s2458_s12 + $0x1c0] sm:$0xff]  ;;  %v429_v60 = vld [vmem:[%s2458_s12 + $0x1d0] sm:$0xff]  ;;  %v432_v61 = vld [vmem:[%s2458_s12 + $0x1e8] sm:$0xff] }
  0xe9   : > { %v434_v62 = vld [vmem:[%s2458_s12 + $0x1f8] sm:$0xff]  ;;  %v431_v63 = vld [vmem:[%s2458_s12 + $0x1e0] sm:$0xff]  ;;  %v433_v0 = vld [vmem:[%s2458_s12 + $0x1f0] sm:$0xff] }
  0xea   : > { %1633 = vmatpush1.bf16.msra.mxu1 %v1632_v1  ;;  %v436_v1 = vld [vmem:[%s2458_s12 + $0x208] sm:$0xff] }
  0xeb   : > { %1697 = vmatpush1.bf16.msra.mxu0 %v1696_v2  ;;  %v438_v2 = vld [vmem:[%s2458_s12 + $0x218] sm:$0xff] }
  0xed   : > { %692 = vmatmul.mubr.f32.vlgmr.msra.gmra.mrb[0].mxu1 %v371_v3  ;;  %v435_v3 = vld [vmem:[%s2458_s12 + $0x200] sm:$0xff] }
  0xee   : > { %949 = vmatmul.mubr.f32.vlgmr.msra.gmra.mrb[0].mxu0 %v373_v4  ;;  %697 = vmatprep.mubr.f32.mxu1 %v376_v5  ;;  %v437_v4 = vld [vmem:[%s2458_s12 + $0x210] sm:$0xff]  ;;  %v440_v5 = vld [vmem:[%s2458_s12 + $0x228] sm:$0xff] }
  0xef   : > { %954 = vmatprep.mubr.f32.mxu0 %v378_v6  ;;  %v442_v6 = vld [vmem:[%s2458_s12 + $0x238] sm:$0xff] }
  0xf1   : > { %698 = vmatmul.mubr.f32.gmra.mrb[2].mxu1 %v375_v7  ;;  %v439_v7 = vld [vmem:[%s2458_s12 + $0x220] sm:$0xff] }
  0xf2   : > { %955 = vmatmul.mubr.f32.gmra.mrb[2].mxu0 %v377_v8  ;;  %703 = vmatprep.mubr.f32.mxu1 %v380_v9  ;;  %v441_v8 = vld [vmem:[%s2458_s12 + $0x230] sm:$0xff]  ;;  %v444_v9 = vld [vmem:[%s2458_s12 + $0x248] sm:$0xff] }
  0xf3   : > { %960 = vmatprep.mubr.f32.mxu0 %v382_v10  ;;  %v446_v10 = vld [vmem:[%s2458_s12 + $0x258] sm:$0xff] }
  0xf5   : > { %704 = vmatmul.mubr.f32.gmra.mrb[4].mxu1 %v379_v11  ;;  %v443_v11 = vld [vmem:[%s2458_s12 + $0x240] sm:$0xff] }
  0xf6   : > { %961 = vmatmul.mubr.f32.gmra.mrb[4].mxu0 %v381_v12  ;;  %709 = vmatprep.mubr.f32.mxu1 %v384_v13  ;;  %v445_v12 = vld [vmem:[%s2458_s12 + $0x250] sm:$0xff]  ;;  %v448_v13 = vld [vmem:[%s2458_s12 + $0x268] sm:$0xff] }
  0xf7   : > { %966 = vmatprep.mubr.f32.mxu0 %v386_v14  ;;  %v450_v14 = vld [vmem:[%s2458_s12 + $0x278] sm:$0xff] }
  0xf9   : > { %710 = vmatmul.mubr.f32.gmra.mrb[6].mxu1 %v383_v15  ;;  %v447_v15 = vld [vmem:[%s2458_s12 + $0x260] sm:$0xff] }
  0xfa   : > { %967 = vmatmul.mubr.f32.gmra.mrb[6].mxu0 %v385_v16  ;;  %715 = vmatprep.mubr.f32.mxu1 %v388_v17  ;;  %v449_v16 = vld [vmem:[%s2458_s12 + $0x270] sm:$0xff]  ;;  %v452_v17 = vld [vmem:[%s2458_s12 + $0x288] sm:$0xff] }
  0xfb   : > { %972 = vmatprep.mubr.f32.mxu0 %v390_v18  ;;  %v454_v18 = vld [vmem:[%s2458_s12 + $0x298] sm:$0xff] }
  0xfd   : > { %716 = vmatmul.mubr.f32.gmra.mrb[8].mxu1 %v387_v19  ;;  %v451_v19 = vld [vmem:[%s2458_s12 + $0x280] sm:$0xff] }
  0xfe   : > { %973 = vmatmul.mubr.f32.gmra.mrb[8].mxu0 %v389_v20  ;;  %721 = vmatprep.mubr.f32.mxu1 %v392_v21  ;;  %v453_v20 = vld [vmem:[%s2458_s12 + $0x290] sm:$0xff]  ;;  %v456_v21 = vld [vmem:[%s2458_s12 + $0x2a8] sm:$0xff] }
  0xff   : > { %978 = vmatprep.mubr.f32.mxu0 %v394_v22  ;;  %v458_v22 = vld [vmem:[%s2458_s12 + $0x2b8] sm:$0xff] }
 0x101   : > { %722 = vmatmul.mubr.f32.gmra.mrb[10].mxu1 %v391_v23  ;;  %v455_v23 = vld [vmem:[%s2458_s12 + $0x2a0] sm:$0xff] }
 0x102   : > { %979 = vmatmul.mubr.f32.gmra.mrb[10].mxu0 %v393_v24  ;;  %727 = vmatprep.mubr.f32.mxu1 %v396_v25  ;;  %v457_v24 = vld [vmem:[%s2458_s12 + $0x2b0] sm:$0xff]  ;;  %v460_v25 = vld [vmem:[%s2458_s12 + $0x2c8] sm:$0xff] }
 0x103   : > { %984 = vmatprep.mubr.f32.mxu0 %v398_v26  ;;  %v462_v26 = vld [vmem:[%s2458_s12 + $0x2d8] sm:$0xff] }
 0x105   : > { %728 = vmatmul.mubr.f32.gmra.mrb[12].mxu1 %v395_v27  ;;  %v459_v27 = vld [vmem:[%s2458_s12 + $0x2c0] sm:$0xff] }
 0x106   : > { %985 = vmatmul.mubr.f32.gmra.mrb[12].mxu0 %v397_v28  ;;  %733 = vmatprep.mubr.f32.mxu1 %v400_v29  ;;  %v461_v28 = vld [vmem:[%s2458_s12 + $0x2d0] sm:$0xff]  ;;  %v464_v29 = vld [vmem:[%s2458_s12 + $0x2e8] sm:$0xff] }
 0x107   : > { %990 = vmatprep.mubr.f32.mxu0 %v402_v30  ;;  %v466_v30 = vld [vmem:[%s2458_s12 + $0x2f8] sm:$0xff] }
 0x109   : > { %734 = vmatmul.mubr.f32.gmra.mrb[14].mxu1 %v399_v31  ;;  %v463_v31 = vld [vmem:[%s2458_s12 + $0x2e0] sm:$0xff] }
 0x10a   : > { %991 = vmatmul.mubr.f32.gmra.mrb[14].mxu0 %v401_v32  ;;  %739 = vmatprep.mubr.f32.mxu1 %v404_v33  ;;  %v465_v32 = vld [vmem:[%s2458_s12 + $0x2f0] sm:$0xff]  ;;  %v468_v33 = vld [vmem:[%s2458_s12 + $0x308] sm:$0xff] }
 0x10b   : > { %996 = vmatprep.mubr.f32.mxu0 %v406_v34  ;;  %v470_v34 = vld [vmem:[%s2458_s12 + $0x318] sm:$0xff] }
 0x10d   : > { %740 = vmatmul.mubr.f32.gmra.mrb[16].mxu1 %v403_v35  ;;  %v467_v35 = vld [vmem:[%s2458_s12 + $0x300] sm:$0xff] }
 0x10e   : > { %997 = vmatmul.mubr.f32.gmra.mrb[16].mxu0 %v405_v36  ;;  %745 = vmatprep.mubr.f32.mxu1 %v408_v37  ;;  %v469_v36 = vld [vmem:[%s2458_s12 + $0x310] sm:$0xff]  ;;  %v472_v37 = vld [vmem:[%s2458_s12 + $0x328] sm:$0xff] }
 0x10f   : > { %1002 = vmatprep.mubr.f32.mxu0 %v410_v38  ;;  %v474_v38 = vld [vmem:[%s2458_s12 + $0x338] sm:$0xff] }
 0x111   : > { %746 = vmatmul.mubr.f32.gmra.mrb[18].mxu1 %v407_v39  ;;  %v471_v39 = vld [vmem:[%s2458_s12 + $0x320] sm:$0xff] }
 0x112   : > { %1003 = vmatmul.mubr.f32.gmra.mrb[18].mxu0 %v409_v40  ;;  %751 = vmatprep.mubr.f32.mxu1 %v412_v41  ;;  %v473_v40 = vld [vmem:[%s2458_s12 + $0x330] sm:$0xff]  ;;  %v476_v41 = vld [vmem:[%s2458_s12 + $0x348] sm:$0xff] }
 0x113   : > { %1008 = vmatprep.mubr.f32.mxu0 %v414_v42  ;;  %v478_v42 = vld [vmem:[%s2458_s12 + $0x358] sm:$0xff] }
 0x115   : > { %752 = vmatmul.mubr.f32.gmra.mrb[20].mxu1 %v411_v43  ;;  %v475_v43 = vld [vmem:[%s2458_s12 + $0x340] sm:$0xff] }
 0x116   : > { %1009 = vmatmul.mubr.f32.gmra.mrb[20].mxu0 %v413_v44  ;;  %757 = vmatprep.mubr.f32.mxu1 %v416_v45  ;;  %v477_v44 = vld [vmem:[%s2458_s12 + $0x350] sm:$0xff]  ;;  %v480_v45 = vld [vmem:[%s2458_s12 + $0x368] sm:$0xff] }
 0x117   : > { %1014 = vmatprep.mubr.f32.mxu0 %v418_v46  ;;  %v482_v46 = vld [vmem:[%s2458_s12 + $0x378] sm:$0xff] }
 0x119   : > { %758 = vmatmul.mubr.f32.gmra.mrb[22].mxu1 %v415_v47  ;;  %v479_v47 = vld [vmem:[%s2458_s12 + $0x360] sm:$0xff] }
 0x11a   : > { %1015 = vmatmul.mubr.f32.gmra.mrb[22].mxu0 %v417_v48  ;;  %763 = vmatprep.mubr.f32.mxu1 %v420_v49  ;;  %v481_v48 = vld [vmem:[%s2458_s12 + $0x370] sm:$0xff]  ;;  %v484_v49 = vld [vmem:[%s2458_s12 + $0x388] sm:$0xff] }
 0x11b   : > { %1020 = vmatprep.mubr.f32.mxu0 %v422_v50  ;;  %v486_v50 = vld [vmem:[%s2458_s12 + $0x398] sm:$0xff] }
 0x11d   : > { %764 = vmatmul.mubr.f32.gmra.mrb[24].mxu1 %v419_v51  ;;  %v483_v51 = vld [vmem:[%s2458_s12 + $0x380] sm:$0xff] }
 0x11e   : > { %1021 = vmatmul.mubr.f32.gmra.mrb[24].mxu0 %v421_v52  ;;  %769 = vmatprep.mubr.f32.mxu1 %v424_v53  ;;  %v485_v52 = vld [vmem:[%s2458_s12 + $0x390] sm:$0xff]  ;;  %v488_v53 = vld [vmem:[%s2458_s12 + $0x3a8] sm:$0xff] }
 0x11f   : > { %1026 = vmatprep.mubr.f32.mxu0 %v426_v54  ;;  %v490_v54 = vld [vmem:[%s2458_s12 + $0x3b8] sm:$0xff] }
 0x121   : > { %770 = vmatmul.mubr.f32.gmra.mrb[26].mxu1 %v423_v55  ;;  %v487_v55 = vld [vmem:[%s2458_s12 + $0x3a0] sm:$0xff] }
 0x122   : > { %1027 = vmatmul.mubr.f32.gmra.mrb[26].mxu0 %v425_v56  ;;  %775 = vmatprep.mubr.f32.mxu1 %v428_v57  ;;  %v489_v56 = vld [vmem:[%s2458_s12 + $0x3b0] sm:$0xff]  ;;  %v492_v57 = vld [vmem:[%s2458_s12 + $0x3c8] sm:$0xff] }
 0x123   : > { %1032 = vmatprep.mubr.f32.mxu0 %v430_v58  ;;  %v494_v58 = vld [vmem:[%s2458_s12 + $0x3d8] sm:$0xff] }
 0x125   : > { %776 = vmatmul.mubr.f32.gmra.mrb[28].mxu1 %v427_v59  ;;  %v491_v59 = vld [vmem:[%s2458_s12 + $0x3c0] sm:$0xff] }
 0x126   : > { %1033 = vmatmul.mubr.f32.gmra.mrb[28].mxu0 %v429_v60  ;;  %781 = vmatprep.mubr.f32.mxu1 %v432_v61  ;;  %v493_v60 = vld [vmem:[%s2458_s12 + $0x3d0] sm:$0xff]  ;;  %v496_v61 = vld [vmem:[%s2458_s12 + $0x3e8] sm:$0xff] }
 0x127   : > { %1038 = vmatprep.mubr.f32.mxu0 %v434_v62  ;;  %v498_v62 = vld [vmem:[%s2458_s12 + $0x3f8] sm:$0xff] }
 0x129   : > { %782 = vmatmul.mubr.f32.gmra.mrb[30].mxu1 %v431_v63  ;;  %v495_v63 = vld [vmem:[%s2458_s12 + $0x3e0] sm:$0xff] }
 0x12a   : > { %1039 = vmatmul.mubr.f32.gmra.mrb[30].mxu0 %v433_v0  ;;  %787 = vmatprep.mubr.f32.mxu1 %v436_v1  ;;  %v497_v0 = vld [vmem:[%s2458_s12 + $0x3f0] sm:$0xff] }
 0x12b   : > { %1044 = vmatprep.mubr.f32.mxu0 %v438_v2  ;;  %v307_v2 = vld [vmem:[#allocation2] sm:$0xff] }
 0x12d   : > { %788 = vmatmul.mubr.f32.gmra.mrb[32].mxu1 %v435_v3 }
 0x12e   : > { %1045 = vmatmul.mubr.f32.gmra.mrb[32].mxu0 %v437_v4  ;;  %793 = vmatprep.mubr.f32.mxu1 %v440_v5 }
 0x12f   : > { %1050 = vmatprep.mubr.f32.mxu0 %v442_v6  ;;  %v308_v6 = vld [vmem:[#allocation2 + $0x8] sm:$0xff] }
 0x131   : > { %794 = vmatmul.mubr.f32.gmra.mrb[34].mxu1 %v439_v7 }
 0x132   : > { %1051 = vmatmul.mubr.f32.gmra.mrb[34].mxu0 %v441_v8  ;;  %799 = vmatprep.mubr.f32.mxu1 %v444_v9 }
 0x133   : > { %1056 = vmatprep.mubr.f32.mxu0 %v446_v10 }
 0x135   : > { %800 = vmatmul.mubr.f32.gmra.mrb[36].mxu1 %v443_v11 }
 0x136   : > { %1057 = vmatmul.mubr.f32.gmra.mrb[36].mxu0 %v445_v12  ;;  %805 = vmatprep.mubr.f32.mxu1 %v448_v13  ;;  %v309_v12 = vld [vmem:[#allocation2 + $0x10] sm:$0xff] }
 0x137   : > { %1062 = vmatprep.mubr.f32.mxu0 %v450_v14 }
 0x139   : > { %806 = vmatmul.mubr.f32.gmra.mrb[38].mxu1 %v447_v15 }
 0x13a   : > { %1063 = vmatmul.mubr.f32.gmra.mrb[38].mxu0 %v449_v16  ;;  %811 = vmatprep.mubr.f32.mxu1 %v452_v17  ;;  %v310_v16 = vld [vmem:[#allocation2 + $0x18] sm:$0xff] }
 0x13b   : > { %1068 = vmatprep.mubr.f32.mxu0 %v454_v18 }
 0x13d   : > { %812 = vmatmul.mubr.f32.gmra.mrb[40].mxu1 %v451_v19 }
 0x13e   : > { %1069 = vmatmul.mubr.f32.gmra.mrb[40].mxu0 %v453_v20  ;;  %817 = vmatprep.mubr.f32.mxu1 %v456_v21 }
 0x13f   : > { %1074 = vmatprep.mubr.f32.mxu0 %v458_v22  ;;  %v311_v22 = vld [vmem:[#allocation2 + $0x20] sm:$0xff] }
 0x141   : > { %818 = vmatmul.mubr.f32.gmra.mrb[42].mxu1 %v455_v23 }
 0x142   : > { %1075 = vmatmul.mubr.f32.gmra.mrb[42].mxu0 %v457_v24  ;;  %823 = vmatprep.mubr.f32.mxu1 %v460_v25 }
 0x143   : > { %1080 = vmatprep.mubr.f32.mxu0 %v462_v26  ;;  %v312_v26 = vld [vmem:[#allocation2 + $0x28] sm:$0xff] }
 0x145   : > { %824 = vmatmul.mubr.f32.gmra.mrb[44].mxu1 %v459_v27 }
 0x146   : > { %1081 = vmatmul.mubr.f32.gmra.mrb[44].mxu0 %v461_v28  ;;  %829 = vmatprep.mubr.f32.mxu1 %v464_v29 }
 0x147   : > { %1086 = vmatprep.mubr.f32.mxu0 %v466_v30 }
 0x149   : > { %830 = vmatmul.mubr.f32.gmra.mrb[46].mxu1 %v463_v31 }
 0x14a   : > { %1087 = vmatmul.mubr.f32.gmra.mrb[46].mxu0 %v465_v32  ;;  %835 = vmatprep.mubr.f32.mxu1 %v468_v33  ;;  %v313_v32 = vld [vmem:[#allocation2 + $0x30] sm:$0xff] }
 0x14b   : > { %1092 = vmatprep.mubr.f32.mxu0 %v470_v34 }
 0x14d   : > { %836 = vmatmul.mubr.f32.gmra.mrb[48].mxu1 %v467_v35 }
 0x14e   : > { %1093 = vmatmul.mubr.f32.gmra.mrb[48].mxu0 %v469_v36  ;;  %841 = vmatprep.mubr.f32.mxu1 %v472_v37  ;;  %v314_v36 = vld [vmem:[#allocation2 + $0x38] sm:$0xff] }
 0x14f   : > { %1098 = vmatprep.mubr.f32.mxu0 %v474_v38 }
 0x151   : > { %842 = vmatmul.mubr.f32.gmra.mrb[50].mxu1 %v471_v39 }
 0x152   : > { %1099 = vmatmul.mubr.f32.gmra.mrb[50].mxu0 %v473_v40  ;;  %847 = vmatprep.mubr.f32.mxu1 %v476_v41 }
 0x153   : > { %1104 = vmatprep.mubr.f32.mxu0 %v478_v42  ;;  %v315_v42 = vld [vmem:[#allocation2 + $0x40] sm:$0xff] }
 0x155   : > { %848 = vmatmul.mubr.f32.gmra.mrb[52].mxu1 %v475_v43 }
 0x156   : > { %1105 = vmatmul.mubr.f32.gmra.mrb[52].mxu0 %v477_v44  ;;  %853 = vmatprep.mubr.f32.mxu1 %v480_v45 }
 0x157   : > { %1110 = vmatprep.mubr.f32.mxu0 %v482_v46  ;;  %v316_v46 = vld [vmem:[#allocation2 + $0x48] sm:$0xff] }
 0x159   : > { %854 = vmatmul.mubr.f32.gmra.mrb[54].mxu1 %v479_v47 }
 0x15a   : > { %1111 = vmatmul.mubr.f32.gmra.mrb[54].mxu0 %v481_v48  ;;  %859 = vmatprep.mubr.f32.mxu1 %v484_v49 }
 0x15b   : > { %1116 = vmatprep.mubr.f32.mxu0 %v486_v50 }
 0x15d   : > { %860 = vmatmul.mubr.f32.gmra.mrb[56].mxu1 %v483_v51 }
 0x15e   : > { %1117 = vmatmul.mubr.f32.gmra.mrb[56].mxu0 %v485_v52  ;;  %865 = vmatprep.mubr.f32.mxu1 %v488_v53  ;;  %v317_v52 = vld [vmem:[#allocation2 + $0x50] sm:$0xff] }
 0x15f   : > { %1122 = vmatprep.mubr.f32.mxu0 %v490_v54 }
 0x161   : > { %866 = vmatmul.mubr.f32.gmra.mrb[58].mxu1 %v487_v55 }
 0x162   : > { %1123 = vmatmul.mubr.f32.gmra.mrb[58].mxu0 %v489_v56  ;;  %871 = vmatprep.mubr.f32.mxu1 %v492_v57  ;;  %v318_v56 = vld [vmem:[#allocation2 + $0x58] sm:$0xff] }
 0x163   : > { %1128 = vmatprep.mubr.f32.mxu0 %v494_v58 }
 0x165   : > { %872 = vmatmul.mubr.f32.gmra.mrb[60].mxu1 %v491_v59 }
 0x166   : > { %1129 = vmatmul.mubr.f32.gmra.mrb[60].mxu0 %v493_v60  ;;  %877 = vmatprep.mubr.f32.mxu1 %v496_v61 }
 0x167   : > { %1134 = vmatprep.mubr.f32.mxu0 %v498_v62  ;;  %v319_v62 = vld [vmem:[#allocation2 + $0x60] sm:$0xff] }
 0x169   : > { %878 = vmatmul.mubr.f32.gmra.mrb[62].mxu1 %v495_v63 }
 0x16a   : > { %1135 = vmatmul.mubr.f32.gmra.mrb[62].mxu0 %v497_v0 }
 0x1c0   : > { %v693_v1 = vpop.f32.mrb[0].mxu1 }
 0x1c1   : > { %v950_v3 = vpop.f32.mrb[0].mxu0  ;;  %v695_v4 = vpop.f32.mrb[1].mxu1 }
 0x1c2   : > { %v951_v5 = vadd.f32 %v950_v3, %v693_v1  ;;  %v952_v7 = vpop.f32.mrb[1].mxu0 }
 0x1c3   : > { %v953_v8 = vadd.f32 %v952_v7, %v695_v4 }
 0x1c4   : > { %v1141_v9 = vadd.f32 %v951_v5, %v307_v2  ;;  %v699_v10 = vpop.f32.mrb[2].mxu1  ;;  %v320_v2 = vld [vmem:[#allocation2 + $0x68] sm:$0xff] }
 0x1c5   : > { %v1142_v11 = vadd.f32 %v953_v8, %v308_v6  ;;  %v956_v13 = vpop.f32.mrb[2].mxu0  ;;  %v701_v14 = vpop.f32.mrb[3].mxu1  ;;  %v321_v8 = vld [vmem:[#allocation2 + $0x70] sm:$0xff] }
 0x1c6   : > { %1205 = vst [vmem:[#allocation2] sm:$0xff] %v1141_v9  ;;  %v957_v15 = vadd.f32 %v956_v13, %v699_v10  ;;  %v958_v17 = vpop.f32.mrb[3].mxu0 }
 0x1c7   : > { %1206 = vst [vmem:[#allocation2 + $0x8] sm:$0xff] %v1142_v11  ;;  %v959_v18 = vadd.f32 %v958_v17, %v701_v14 }
 0x1c8   : > { %v1143_v19 = vadd.f32 %v957_v15, %v309_v12  ;;  %v705_v20 = vpop.f32.mrb[4].mxu1  ;;  %v322_v12 = vld [vmem:[#allocation2 + $0x78] sm:$0xff] }
 0x1c9   : > { %v1144_v21 = vadd.f32 %v959_v18, %v310_v16  ;;  %v962_v23 = vpop.f32.mrb[4].mxu0  ;;  %v707_v24 = vpop.f32.mrb[5].mxu1  ;;  %v323_v18 = vld [vmem:[#allocation2 + $0x80] sm:$0xff] }
 0x1ca   : > { %1207 = vst [vmem:[#allocation2 + $0x10] sm:$0xff] %v1143_v19  ;;  %v963_v25 = vadd.f32 %v962_v23, %v705_v20  ;;  %v964_v27 = vpop.f32.mrb[5].mxu0 }
 0x1cb   : > { %1208 = vst [vmem:[#allocation2 + $0x18] sm:$0xff] %v1144_v21  ;;  %v965_v28 = vadd.f32 %v964_v27, %v707_v24 }
 0x1cc   : > { %v1145_v29 = vadd.f32 %v963_v25, %v311_v22  ;;  %v711_v30 = vpop.f32.mrb[6].mxu1  ;;  %v324_v22 = vld [vmem:[#allocation2 + $0x88] sm:$0xff] }
 0x1cd   : > { %v1146_v31 = vadd.f32 %v965_v28, %v312_v26  ;;  %v968_v33 = vpop.f32.mrb[6].mxu0  ;;  %v713_v34 = vpop.f32.mrb[7].mxu1  ;;  %v325_v28 = vld [vmem:[#allocation2 + $0x90] sm:$0xff] }
 0x1ce   : > { %1209 = vst [vmem:[#allocation2 + $0x20] sm:$0xff] %v1145_v29  ;;  %v969_v35 = vadd.f32 %v968_v33, %v711_v30  ;;  %v970_v37 = vpop.f32.mrb[7].mxu0 }
 0x1cf   : > { %1210 = vst [vmem:[#allocation2 + $0x28] sm:$0xff] %v1146_v31  ;;  %v971_v38 = vadd.f32 %v970_v37, %v713_v34 }
 0x1d0   : > { %v1147_v39 = vadd.f32 %v969_v35, %v313_v32  ;;  %v717_v40 = vpop.f32.mrb[8].mxu1  ;;  %v326_v32 = vld [vmem:[#allocation2 + $0x98] sm:$0xff] }
 0x1d1   : > { %v1148_v41 = vadd.f32 %v971_v38, %v314_v36  ;;  %v974_v43 = vpop.f32.mrb[8].mxu0  ;;  %v719_v44 = vpop.f32.mrb[9].mxu1  ;;  %v327_v38 = vld [vmem:[#allocation2 + $0xa0] sm:$0xff] }
 0x1d2   : > { %1211 = vst [vmem:[#allocation2 + $0x30] sm:$0xff] %v1147_v39  ;;  %v975_v45 = vadd.f32 %v974_v43, %v717_v40  ;;  %v976_v47 = vpop.f32.mrb[9].mxu0 }
 0x1d3   : > { %1212 = vst [vmem:[#allocation2 + $0x38] sm:$0xff] %v1148_v41  ;;  %v977_v48 = vadd.f32 %v976_v47, %v719_v44 }
 0x1d4   : > { %v1149_v49 = vadd.f32 %v975_v45, %v315_v42  ;;  %v723_v50 = vpop.f32.mrb[10].mxu1  ;;  %v328_v42 = vld [vmem:[#allocation2 + $0xa8] sm:$0xff] }
 0x1d5   : > { %v1150_v51 = vadd.f32 %v977_v48, %v316_v46  ;;  %v980_v53 = vpop.f32.mrb[10].mxu0  ;;  %v725_v54 = vpop.f32.mrb[11].mxu1  ;;  %v329_v48 = vld [vmem:[#allocation2 + $0xb0] sm:$0xff] }
 0x1d6   : > { %1213 = vst [vmem:[#allocation2 + $0x40] sm:$0xff] %v1149_v49  ;;  %v981_v55 = vadd.f32 %v980_v53, %v723_v50  ;;  %v982_v57 = vpop.f32.mrb[11].mxu0 }
 0x1d7   : > { %1214 = vst [vmem:[#allocation2 + $0x48] sm:$0xff] %v1150_v51  ;;  %v983_v58 = vadd.f32 %v982_v57, %v725_v54 }
 0x1d8   : > { %v1151_v59 = vadd.f32 %v981_v55, %v317_v52  ;;  %v729_v60 = vpop.f32.mrb[12].mxu1  ;;  %v330_v52 = vld [vmem:[#allocation2 + $0xb8] sm:$0xff] }
 0x1d9   : > { %v1152_v61 = vadd.f32 %v983_v58, %v318_v56  ;;  %v986_v63 = vpop.f32.mrb[12].mxu0  ;;  %v731_v0 = vpop.f32.mrb[13].mxu1  ;;  %v331_v58 = vld [vmem:[#allocation2 + $0xc0] sm:$0xff] }
 0x1da   : > { %1215 = vst [vmem:[#allocation2 + $0x50] sm:$0xff] %v1151_v59  ;;  %v987_v1 = vadd.f32 %v986_v63, %v729_v60  ;;  %v988_v3 = vpop.f32.mrb[13].mxu0 }
 0x1db   : > { %1216 = vst [vmem:[#allocation2 + $0x58] sm:$0xff] %v1152_v61  ;;  %v989_v4 = vadd.f32 %v988_v3, %v731_v0 }
 0x1dc   : > { %v1153_v5 = vadd.f32 %v987_v1, %v319_v62  ;;  %v735_v6 = vpop.f32.mrb[14].mxu1  ;;  %v332_v62 = vld [vmem:[#allocation2 + $0xc8] sm:$0xff] }
 0x1dd   : > { %v1154_v7 = vadd.f32 %v989_v4, %v320_v2  ;;  %v992_v9 = vpop.f32.mrb[14].mxu0  ;;  %v737_v10 = vpop.f32.mrb[15].mxu1  ;;  %v333_v4 = vld [vmem:[#allocation2 + $0xd0] sm:$0xff] }
 0x1de   : > { %1217 = vst [vmem:[#allocation2 + $0x60] sm:$0xff] %v1153_v5  ;;  %v993_v11 = vadd.f32 %v992_v9, %v735_v6  ;;  %v994_v13 = vpop.f32.mrb[15].mxu0 }
 0x1df   : > { %1218 = vst [vmem:[#allocation2 + $0x68] sm:$0xff] %v1154_v7  ;;  %v995_v14 = vadd.f32 %v994_v13, %v737_v10 }
 0x1e0   : > { %v1155_v15 = vadd.f32 %v993_v11, %v321_v8  ;;  %v741_v16 = vpop.f32.mrb[16].mxu1  ;;  %v334_v8 = vld [vmem:[#allocation2 + $0xd8] sm:$0xff] }
 0x1e1   : > { %v1156_v17 = vadd.f32 %v995_v14, %v322_v12  ;;  %v998_v19 = vpop.f32.mrb[16].mxu0  ;;  %v743_v20 = vpop.f32.mrb[17].mxu1  ;;  %v335_v14 = vld [vmem:[#allocation2 + $0xe0] sm:$0xff] }
 0x1e2   : > { %1219 = vst [vmem:[#allocation2 + $0x70] sm:$0xff] %v1155_v15  ;;  %v999_v21 = vadd.f32 %v998_v19, %v741_v16  ;;  %v1000_v23 = vpop.f32.mrb[17].mxu0 }
 0x1e3   : > { %1220 = vst [vmem:[#allocation2 + $0x78] sm:$0xff] %v1156_v17  ;;  %v1001_v24 = vadd.f32 %v1000_v23, %v743_v20 }
 0x1e4   : > { %v1157_v25 = vadd.f32 %v999_v21, %v323_v18  ;;  %v747_v26 = vpop.f32.mrb[18].mxu1  ;;  %v336_v18 = vld [vmem:[#allocation2 + $0xe8] sm:$0xff] }
 0x1e5   : > { %v1158_v27 = vadd.f32 %v1001_v24, %v324_v22  ;;  %v1004_v29 = vpop.f32.mrb[18].mxu0  ;;  %v749_v30 = vpop.f32.mrb[19].mxu1  ;;  %v337_v24 = vld [vmem:[#allocation2 + $0xf0] sm:$0xff] }
 0x1e6   : > { %1221 = vst [vmem:[#allocation2 + $0x80] sm:$0xff] %v1157_v25  ;;  %v1005_v31 = vadd.f32 %v1004_v29, %v747_v26  ;;  %v1006_v33 = vpop.f32.mrb[19].mxu0 }
 0x1e7   : > { %1222 = vst [vmem:[#allocation2 + $0x88] sm:$0xff] %v1158_v27  ;;  %v1007_v34 = vadd.f32 %v1006_v33, %v749_v30 }
 0x1e8   : > { %v1159_v35 = vadd.f32 %v1005_v31, %v325_v28  ;;  %v753_v36 = vpop.f32.mrb[20].mxu1  ;;  %v338_v28 = vld [vmem:[#allocation2 + $0xf8] sm:$0xff] }
 0x1e9   : > { %v1160_v37 = vadd.f32 %v1007_v34, %v326_v32  ;;  %v1010_v39 = vpop.f32.mrb[20].mxu0  ;;  %v755_v40 = vpop.f32.mrb[21].mxu1  ;;  %v339_v34 = vld [vmem:[#allocation2 + $0x100] sm:$0xff] }
 0x1ea   : > { %1223 = vst [vmem:[#allocation2 + $0x90] sm:$0xff] %v1159_v35  ;;  %v1011_v41 = vadd.f32 %v1010_v39, %v753_v36  ;;  %v1012_v43 = vpop.f32.mrb[21].mxu0 }
 0x1eb   : > { %1224 = vst [vmem:[#allocation2 + $0x98] sm:$0xff] %v1160_v37  ;;  %v1013_v44 = vadd.f32 %v1012_v43, %v755_v40 }
 0x1ec   : > { %v1161_v45 = vadd.f32 %v1011_v41, %v327_v38  ;;  %v759_v46 = vpop.f32.mrb[22].mxu1  ;;  %v340_v38 = vld [vmem:[#allocation2 + $0x108] sm:$0xff] }
 0x1ed   : > { %v1162_v47 = vadd.f32 %v1013_v44, %v328_v42  ;;  %v1016_v49 = vpop.f32.mrb[22].mxu0  ;;  %v761_v50 = vpop.f32.mrb[23].mxu1  ;;  %v341_v44 = vld [vmem:[#allocation2 + $0x110] sm:$0xff] }
 0x1ee   : > { %1225 = vst [vmem:[#allocation2 + $0xa0] sm:$0xff] %v1161_v45  ;;  %v1017_v51 = vadd.f32 %v1016_v49, %v759_v46  ;;  %v1018_v53 = vpop.f32.mrb[23].mxu0 }
 0x1ef   : > { %1226 = vst [vmem:[#allocation2 + $0xa8] sm:$0xff] %v1162_v47  ;;  %v1019_v54 = vadd.f32 %v1018_v53, %v761_v50 }
 0x1f0   : > { %v1163_v55 = vadd.f32 %v1017_v51, %v329_v48  ;;  %v765_v56 = vpop.f32.mrb[24].mxu1  ;;  %v342_v48 = vld [vmem:[#allocation2 + $0x118] sm:$0xff] }
 0x1f1   : > { %v1164_v57 = vadd.f32 %v1019_v54, %v330_v52  ;;  %v1022_v59 = vpop.f32.mrb[24].mxu0  ;;  %v767_v60 = vpop.f32.mrb[25].mxu1  ;;  %v343_v54 = vld [vmem:[#allocation2 + $0x120] sm:$0xff] }
 0x1f2   : > { %1227 = vst [vmem:[#allocation2 + $0xb0] sm:$0xff] %v1163_v55  ;;  %v1023_v61 = vadd.f32 %v1022_v59, %v765_v56  ;;  %v1024_v63 = vpop.f32.mrb[25].mxu0 }
 0x1f3   : > { %1228 = vst [vmem:[#allocation2 + $0xb8] sm:$0xff] %v1164_v57  ;;  %v1025_v0 = vadd.f32 %v1024_v63, %v767_v60 }
 0x1f4   : > { %v1165_v1 = vadd.f32 %v1023_v61, %v331_v58  ;;  %v771_v2 = vpop.f32.mrb[26].mxu1  ;;  %v344_v58 = vld [vmem:[#allocation2 + $0x128] sm:$0xff] }
 0x1f5   : > { %v1166_v3 = vadd.f32 %v1025_v0, %v332_v62  ;;  %v1028_v5 = vpop.f32.mrb[26].mxu0  ;;  %v773_v6 = vpop.f32.mrb[27].mxu1  ;;  %v345_v0 = vld [vmem:[#allocation2 + $0x130] sm:$0xff] }
 0x1f6   : > { %1229 = vst [vmem:[#allocation2 + $0xc0] sm:$0xff] %v1165_v1  ;;  %v1029_v7 = vadd.f32 %v1028_v5, %v771_v2  ;;  %v1030_v9 = vpop.f32.mrb[27].mxu0 }
 0x1f7   : > { %1230 = vst [vmem:[#allocation2 + $0xc8] sm:$0xff] %v1166_v3  ;;  %v1031_v10 = vadd.f32 %v1030_v9, %v773_v6 }
 0x1f8   : > { %v1167_v11 = vadd.f32 %v1029_v7, %v333_v4  ;;  %v777_v12 = vpop.f32.mrb[28].mxu1  ;;  %v346_v4 = vld [vmem:[#allocation2 + $0x138] sm:$0xff] }
 0x1f9   : > { %v1168_v13 = vadd.f32 %v1031_v10, %v334_v8  ;;  %v1034_v15 = vpop.f32.mrb[28].mxu0  ;;  %v779_v16 = vpop.f32.mrb[29].mxu1  ;;  %v347_v10 = vld [vmem:[#allocation2 + $0x140] sm:$0xff] }
 0x1fa   : > { %1231 = vst [vmem:[#allocation2 + $0xd0] sm:$0xff] %v1167_v11  ;;  %v1035_v17 = vadd.f32 %v1034_v15, %v777_v12  ;;  %v1036_v19 = vpop.f32.mrb[29].mxu0 }
 0x1fb   : > { %1232 = vst [vmem:[#allocation2 + $0xd8] sm:$0xff] %v1168_v13  ;;  %v1037_v20 = vadd.f32 %v1036_v19, %v779_v16 }
 0x1fc   : > { %v1169_v21 = vadd.f32 %v1035_v17, %v335_v14  ;;  %v783_v22 = vpop.f32.mrb[30].mxu1  ;;  %v348_v14 = vld [vmem:[#allocation2 + $0x148] sm:$0xff] }
 0x1fd   : > { %v1170_v23 = vadd.f32 %v1037_v20, %v336_v18  ;;  %v1040_v25 = vpop.f32.mrb[30].mxu0  ;;  %v785_v26 = vpop.f32.mrb[31].mxu1  ;;  %v349_v20 = vld [vmem:[#allocation2 + $0x150] sm:$0xff] }
 0x1fe   : > { %1233 = vst [vmem:[#allocation2 + $0xe0] sm:$0xff] %v1169_v21  ;;  %v1041_v27 = vadd.f32 %v1040_v25, %v783_v22  ;;  %v1042_v29 = vpop.f32.mrb[31].mxu0 }
 0x1ff   : > { %1234 = vst [vmem:[#allocation2 + $0xe8] sm:$0xff] %v1170_v23  ;;  %v1043_v30 = vadd.f32 %v1042_v29, %v785_v26 }
 0x200   : > { %v1171_v31 = vadd.f32 %v1041_v27, %v337_v24  ;;  %v789_v32 = vpop.f32.mrb[32].mxu1  ;;  %v350_v24 = vld [vmem:[#allocation2 + $0x158] sm:$0xff] }
 0x201   : > { %v1172_v33 = vadd.f32 %v1043_v30, %v338_v28  ;;  %v1046_v35 = vpop.f32.mrb[32].mxu0  ;;  %v791_v36 = vpop.f32.mrb[33].mxu1  ;;  %v351_v30 = vld [vmem:[#allocation2 + $0x160] sm:$0xff] }
 0x202   : > { %1235 = vst [vmem:[#allocation2 + $0xf0] sm:$0xff] %v1171_v31  ;;  %v1047_v37 = vadd.f32 %v1046_v35, %v789_v32  ;;  %v1048_v39 = vpop.f32.mrb[33].mxu0 }
 0x203   : > { %1236 = vst [vmem:[#allocation2 + $0xf8] sm:$0xff] %v1172_v33  ;;  %v1049_v40 = vadd.f32 %v1048_v39, %v791_v36 }
 0x204   : > { %v1173_v41 = vadd.f32 %v1047_v37, %v339_v34  ;;  %v795_v42 = vpop.f32.mrb[34].mxu1  ;;  %v352_v34 = vld [vmem:[#allocation2 + $0x168] sm:$0xff] }
 0x205   : > { %v1174_v43 = vadd.f32 %v1049_v40, %v340_v38  ;;  %v1052_v45 = vpop.f32.mrb[34].mxu0  ;;  %v797_v46 = vpop.f32.mrb[35].mxu1  ;;  %v353_v40 = vld [vmem:[#allocation2 + $0x170] sm:$0xff] }
 0x206   : > { %1237 = vst [vmem:[#allocation2 + $0x100] sm:$0xff] %v1173_v41  ;;  %v1053_v47 = vadd.f32 %v1052_v45, %v795_v42  ;;  %v1054_v49 = vpop.f32.mrb[35].mxu0 }
 0x207   : > { %1238 = vst [vmem:[#allocation2 + $0x108] sm:$0xff] %v1174_v43  ;;  %v1055_v50 = vadd.f32 %v1054_v49, %v797_v46 }
 0x208   : > { %v1175_v51 = vadd.f32 %v1053_v47, %v341_v44  ;;  %v801_v52 = vpop.f32.mrb[36].mxu1  ;;  %v354_v44 = vld [vmem:[#allocation2 + $0x178] sm:$0xff] }
 0x209   : > { %v1176_v53 = vadd.f32 %v1055_v50, %v342_v48  ;;  %v1058_v55 = vpop.f32.mrb[36].mxu0  ;;  %v803_v56 = vpop.f32.mrb[37].mxu1  ;;  %v355_v50 = vld [vmem:[#allocation2 + $0x180] sm:$0xff] }
 0x20a   : > { %1239 = vst [vmem:[#allocation2 + $0x110] sm:$0xff] %v1175_v51  ;;  %v1059_v57 = vadd.f32 %v1058_v55, %v801_v52  ;;  %v1060_v59 = vpop.f32.mrb[37].mxu0 }
 0x20b   : > { %1240 = vst [vmem:[#allocation2 + $0x118] sm:$0xff] %v1176_v53  ;;  %v1061_v60 = vadd.f32 %v1060_v59, %v803_v56 }
 0x20c   : > { %v1177_v61 = vadd.f32 %v1059_v57, %v343_v54  ;;  %v807_v62 = vpop.f32.mrb[38].mxu1  ;;  %v356_v54 = vld [vmem:[#allocation2 + $0x188] sm:$0xff] }
 0x20d   : > { %v1178_v63 = vadd.f32 %v1061_v60, %v344_v58  ;;  %v1064_v1 = vpop.f32.mrb[38].mxu0  ;;  %v809_v2 = vpop.f32.mrb[39].mxu1  ;;  %v357_v60 = vld [vmem:[#allocation2 + $0x190] sm:$0xff] }
 0x20e   : > { %1241 = vst [vmem:[#allocation2 + $0x120] sm:$0xff] %v1177_v61  ;;  %v1065_v3 = vadd.f32 %v1064_v1, %v807_v62  ;;  %v1066_v5 = vpop.f32.mrb[39].mxu0 }
 0x20f   : > { %1242 = vst [vmem:[#allocation2 + $0x128] sm:$0xff] %v1178_v63  ;;  %v1067_v6 = vadd.f32 %v1066_v5, %v809_v2 }
 0x210   : > { %v1179_v7 = vadd.f32 %v1065_v3, %v345_v0  ;;  %v813_v8 = vpop.f32.mrb[40].mxu1  ;;  %v358_v0 = vld [vmem:[#allocation2 + $0x198] sm:$0xff] }
 0x211   : > { %v1180_v9 = vadd.f32 %v1067_v6, %v346_v4  ;;  %v1070_v11 = vpop.f32.mrb[40].mxu0  ;;  %v815_v12 = vpop.f32.mrb[41].mxu1  ;;  %v359_v6 = vld [vmem:[#allocation2 + $0x1a0] sm:$0xff] }
 0x212   : > { %1243 = vst [vmem:[#allocation2 + $0x130] sm:$0xff] %v1179_v7  ;;  %v1071_v13 = vadd.f32 %v1070_v11, %v813_v8  ;;  %v1072_v15 = vpop.f32.mrb[41].mxu0 }
 0x213   : > { %1244 = vst [vmem:[#allocation2 + $0x138] sm:$0xff] %v1180_v9  ;;  %v1073_v16 = vadd.f32 %v1072_v15, %v815_v12 }
 0x214   : > { %v1181_v17 = vadd.f32 %v1071_v13, %v347_v10  ;;  %v819_v18 = vpop.f32.mrb[42].mxu1  ;;  %v360_v10 = vld [vmem:[#allocation2 + $0x1a8] sm:$0xff] }
 0x215   : > { %v1182_v19 = vadd.f32 %v1073_v16, %v348_v14  ;;  %v1076_v21 = vpop.f32.mrb[42].mxu0  ;;  %v821_v22 = vpop.f32.mrb[43].mxu1  ;;  %v361_v16 = vld [vmem:[#allocation2 + $0x1b0] sm:$0xff] }
 0x216   : > { %1245 = vst [vmem:[#allocation2 + $0x140] sm:$0xff] %v1181_v17  ;;  %v1077_v23 = vadd.f32 %v1076_v21, %v819_v18  ;;  %v1078_v25 = vpop.f32.mrb[43].mxu0 }
 0x217   : > { %1246 = vst [vmem:[#allocation2 + $0x148] sm:$0xff] %v1182_v19  ;;  %v1079_v26 = vadd.f32 %v1078_v25, %v821_v22 }
 0x218   : > { %v1183_v27 = vadd.f32 %v1077_v23, %v349_v20  ;;  %v825_v28 = vpop.f32.mrb[44].mxu1  ;;  %v362_v20 = vld [vmem:[#allocation2 + $0x1b8] sm:$0xff] }
 0x219   : > { %v1184_v29 = vadd.f32 %v1079_v26, %v350_v24  ;;  %v1082_v31 = vpop.f32.mrb[44].mxu0  ;;  %v827_v32 = vpop.f32.mrb[45].mxu1  ;;  %v363_v26 = vld [vmem:[#allocation2 + $0x1c0] sm:$0xff] }
 0x21a   : > { %1247 = vst [vmem:[#allocation2 + $0x150] sm:$0xff] %v1183_v27  ;;  %v1083_v33 = vadd.f32 %v1082_v31, %v825_v28  ;;  %v1084_v35 = vpop.f32.mrb[45].mxu0 }
 0x21b   : > { %1248 = vst [vmem:[#allocation2 + $0x158] sm:$0xff] %v1184_v29  ;;  %v1085_v36 = vadd.f32 %v1084_v35, %v827_v32 }
 0x21c   : > { %v1185_v37 = vadd.f32 %v1083_v33, %v351_v30  ;;  %v831_v38 = vpop.f32.mrb[46].mxu1  ;;  %v364_v30 = vld [vmem:[#allocation2 + $0x1c8] sm:$0xff] }
 0x21d   : > { %v1186_v39 = vadd.f32 %v1085_v36, %v352_v34  ;;  %v1088_v41 = vpop.f32.mrb[46].mxu0  ;;  %v833_v42 = vpop.f32.mrb[47].mxu1  ;;  %v365_v36 = vld [vmem:[#allocation2 + $0x1d0] sm:$0xff] }
 0x21e   : > { %1249 = vst [vmem:[#allocation2 + $0x160] sm:$0xff] %v1185_v37  ;;  %v1089_v43 = vadd.f32 %v1088_v41, %v831_v38  ;;  %v1090_v45 = vpop.f32.mrb[47].mxu0 }
 0x21f   : > { %1250 = vst [vmem:[#allocation2 + $0x168] sm:$0xff] %v1186_v39  ;;  %v1091_v46 = vadd.f32 %v1090_v45, %v833_v42 }
 0x220   : > { %v1187_v47 = vadd.f32 %v1089_v43, %v353_v40  ;;  %v837_v48 = vpop.f32.mrb[48].mxu1  ;;  %v366_v40 = vld [vmem:[#allocation2 + $0x1d8] sm:$0xff] }
 0x221   : > { %v1188_v49 = vadd.f32 %v1091_v46, %v354_v44  ;;  %v1094_v51 = vpop.f32.mrb[48].mxu0  ;;  %v839_v52 = vpop.f32.mrb[49].mxu1  ;;  %v367_v46 = vld [vmem:[#allocation2 + $0x1e0] sm:$0xff] }
 0x222   : > { %1251 = vst [vmem:[#allocation2 + $0x170] sm:$0xff] %v1187_v47  ;;  %v1095_v53 = vadd.f32 %v1094_v51, %v837_v48  ;;  %v1096_v55 = vpop.f32.mrb[49].mxu0 }
 0x223   : > { %1252 = vst [vmem:[#allocation2 + $0x178] sm:$0xff] %v1188_v49  ;;  %v1097_v56 = vadd.f32 %v1096_v55, %v839_v52 }
 0x224   : > { %v1189_v57 = vadd.f32 %v1095_v53, %v355_v50  ;;  %v843_v58 = vpop.f32.mrb[50].mxu1  ;;  %v368_v50 = vld [vmem:[#allocation2 + $0x1e8] sm:$0xff] }
 0x225   : > { %v1190_v59 = vadd.f32 %v1097_v56, %v356_v54  ;;  %v1100_v61 = vpop.f32.mrb[50].mxu0  ;;  %v845_v62 = vpop.f32.mrb[51].mxu1  ;;  %v369_v56 = vld [vmem:[#allocation2 + $0x1f0] sm:$0xff] }
 0x226   : > { %1253 = vst [vmem:[#allocation2 + $0x180] sm:$0xff] %v1189_v57  ;;  %v1101_v63 = vadd.f32 %v1100_v61, %v843_v58  ;;  %v1102_v1 = vpop.f32.mrb[51].mxu0 }
 0x227   : > { %1254 = vst [vmem:[#allocation2 + $0x188] sm:$0xff] %v1190_v59  ;;  %v1103_v2 = vadd.f32 %v1102_v1, %v845_v62  ;;  %v1273_v1 = vld [vmem:[#allocation2] sm:$0xff] (!%p1559_p12) }
 0x228   : > { %v1191_v3 = vadd.f32 %v1101_v63, %v357_v60  ;;  %v849_v4 = vpop.f32.mrb[52].mxu1  ;;  %v370_v60 = vld [vmem:[#allocation2 + $0x1f8] sm:$0xff]  ;;  %1337 = vst [vmem:[%s2474_s25] sm:$0xff] (!%p1559_p12), %v1273_v1 }
 0x229   : > { %v1192_v5 = vadd.f32 %v1103_v2, %v358_v0  ;;  %v1106_v7 = vpop.f32.mrb[52].mxu0  ;;  %v851_v8 = vpop.f32.mrb[53].mxu1  ;;  %v1274_v2 = vld [vmem:[#allocation2 + $0x8] sm:$0xff] (!%p1559_p12) }
 0x22a   : > { %1255 = vst [vmem:[#allocation2 + $0x190] sm:$0xff] %v1191_v3  ;;  %v1107_v9 = vadd.f32 %v1106_v7, %v849_v4  ;;  %v1108_v11 = vpop.f32.mrb[53].mxu0  ;;  %v1275_v3 = vld [vmem:[#allocation2 + $0x10] sm:$0xff] (!%p1559_p12)  ;;  %1338 = vst [vmem:[%s2474_s25 + $0x8] sm:$0xff] (!%p1559_p12), %v1274_v2  ;;  %v1276_v4 = vld [vmem:[#allocation2 + $0x18] sm:$0xff] (!%p1559_p12) }
 0x22b   : > { %1256 = vst [vmem:[#allocation2 + $0x198] sm:$0xff] %v1192_v5  ;;  %v1109_v12 = vadd.f32 %v1108_v11, %v851_v8  ;;  %1339 = vst [vmem:[%s2474_s25 + $0x10] sm:$0xff] (!%p1559_p12), %v1275_v3  ;;  %v1277_v5 = vld [vmem:[#allocation2 + $0x20] sm:$0xff] (!%p1559_p12)  ;;  %v1279_v7 = vld [vmem:[#allocation2 + $0x30] sm:$0xff] (!%p1559_p12) }
 0x22c   : > { %v1193_v13 = vadd.f32 %v1107_v9, %v359_v6  ;;  %v855_v14 = vpop.f32.mrb[54].mxu1  ;;  %v1278_v6 = vld [vmem:[#allocation2 + $0x28] sm:$0xff] (!%p1559_p12)  ;;  %1340 = vst [vmem:[%s2474_s25 + $0x18] sm:$0xff] (!%p1559_p12), %v1276_v4  ;;  %1341 = vst [vmem:[%s2474_s25 + $0x20] sm:$0xff] (!%p1559_p12), %v1277_v5  ;;  %v1280_v8 = vld [vmem:[#allocation2 + $0x38] sm:$0xff] (!%p1559_p12) }
 0x22d   : > { %v1194_v15 = vadd.f32 %v1109_v12, %v360_v10  ;;  %v1112_v17 = vpop.f32.mrb[54].mxu0  ;;  %v857_v18 = vpop.f32.mrb[55].mxu1  ;;  %1342 = vst [vmem:[%s2474_s25 + $0x28] sm:$0xff] (!%p1559_p12), %v1278_v6  ;;  %v1281_v9 = vld [vmem:[#allocation2 + $0x40] sm:$0xff] (!%p1559_p12)  ;;  %1343 = vst [vmem:[%s2474_s25 + $0x30] sm:$0xff] (!%p1559_p12), %v1279_v7  ;;  %v1282_v10 = vld [vmem:[#allocation2 + $0x48] sm:$0xff] (!%p1559_p12) }
 0x22e   : > { %1257 = vst [vmem:[#allocation2 + $0x1a0] sm:$0xff] %v1193_v13  ;;  %v1113_v19 = vadd.f32 %v1112_v17, %v855_v14  ;;  %v1114_v21 = vpop.f32.mrb[55].mxu0  ;;  %1344 = vst [vmem:[%s2474_s25 + $0x38] sm:$0xff] (!%p1559_p12), %v1280_v8  ;;  %v1283_v11 = vld [vmem:[#allocation2 + $0x50] sm:$0xff] (!%p1559_p12)  ;;  %v1284_v12 = vld [vmem:[#allocation2 + $0x58] sm:$0xff] (!%p1559_p12) }
 0x22f   : > { %1258 = vst [vmem:[#allocation2 + $0x1a8] sm:$0xff] %v1194_v15  ;;  %v1115_v22 = vadd.f32 %v1114_v21, %v857_v18  ;;  %1345 = vst [vmem:[%s2474_s25 + $0x40] sm:$0xff] (!%p1559_p12), %v1281_v9  ;;  %v1285_v13 = vld [vmem:[#allocation2 + $0x60] sm:$0xff] (!%p1559_p12)  ;;  %v1286_v14 = vld [vmem:[#allocation2 + $0x68] sm:$0xff] (!%p1559_p12) }
 0x230   : > { %v1195_v23 = vadd.f32 %v1113_v19, %v361_v16  ;;  %v861_v24 = vpop.f32.mrb[56].mxu1  ;;  %1346 = vst [vmem:[%s2474_s25 + $0x48] sm:$0xff] (!%p1559_p12), %v1282_v10  ;;  %1347 = vst [vmem:[%s2474_s25 + $0x50] sm:$0xff] (!%p1559_p12), %v1283_v11  ;;  %v1287_v15 = vld [vmem:[#allocation2 + $0x70] sm:$0xff] (!%p1559_p12)  ;;  %v1288_v16 = vld [vmem:[#allocation2 + $0x78] sm:$0xff] (!%p1559_p12) }
 0x231   : > { %v1196_v25 = vadd.f32 %v1115_v22, %v362_v20  ;;  %v1118_v27 = vpop.f32.mrb[56].mxu0  ;;  %v863_v28 = vpop.f32.mrb[57].mxu1  ;;  %1348 = vst [vmem:[%s2474_s25 + $0x58] sm:$0xff] (!%p1559_p12), %v1284_v12  ;;  %1349 = vst [vmem:[%s2474_s25 + $0x60] sm:$0xff] (!%p1559_p12), %v1285_v13  ;;  %v1289_v17 = vld [vmem:[#allocation2 + $0x80] sm:$0xff] (!%p1559_p12)  ;;  %v1290_v18 = vld [vmem:[#allocation2 + $0x88] sm:$0xff] (!%p1559_p12) }
 0x232   : > { %1259 = vst [vmem:[#allocation2 + $0x1b0] sm:$0xff] %v1195_v23  ;;  %v1119_v29 = vadd.f32 %v1118_v27, %v861_v24  ;;  %v1120_v31 = vpop.f32.mrb[57].mxu0  ;;  %1350 = vst [vmem:[%s2474_s25 + $0x68] sm:$0xff] (!%p1559_p12), %v1286_v14  ;;  %v1291_v19 = vld [vmem:[#allocation2 + $0x90] sm:$0xff] (!%p1559_p12)  ;;  %v1292_v20 = vld [vmem:[#allocation2 + $0x98] sm:$0xff] (!%p1559_p12) }
 0x233   : > { %1260 = vst [vmem:[#allocation2 + $0x1b8] sm:$0xff] %v1196_v25  ;;  %v1121_v32 = vadd.f32 %v1120_v31, %v863_v28  ;;  %1351 = vst [vmem:[%s2474_s25 + $0x70] sm:$0xff] (!%p1559_p12), %v1287_v15  ;;  %v1293_v21 = vld [vmem:[#allocation2 + $0xa0] sm:$0xff] (!%p1559_p12)  ;;  %v1294_v22 = vld [vmem:[#allocation2 + $0xa8] sm:$0xff] (!%p1559_p12) }
 0x234   : > { %v1197_v33 = vadd.f32 %v1119_v29, %v363_v26  ;;  %v867_v34 = vpop.f32.mrb[58].mxu1  ;;  %1352 = vst [vmem:[%s2474_s25 + $0x78] sm:$0xff] (!%p1559_p12), %v1288_v16  ;;  %1353 = vst [vmem:[%s2474_s25 + $0x80] sm:$0xff] (!%p1559_p12), %v1289_v17  ;;  %v1295_v23 = vld [vmem:[#allocation2 + $0xb0] sm:$0xff] (!%p1559_p12)  ;;  %v1296_v24 = vld [vmem:[#allocation2 + $0xb8] sm:$0xff] (!%p1559_p12) }
 0x235   : > { %v1198_v35 = vadd.f32 %v1121_v32, %v364_v30  ;;  %v1124_v37 = vpop.f32.mrb[58].mxu0  ;;  %v869_v38 = vpop.f32.mrb[59].mxu1  ;;  %1354 = vst [vmem:[%s2474_s25 + $0x88] sm:$0xff] (!%p1559_p12), %v1290_v18  ;;  %1355 = vst [vmem:[%s2474_s25 + $0x90] sm:$0xff] (!%p1559_p12), %v1291_v19  ;;  %v1297_v25 = vld [vmem:[#allocation2 + $0xc0] sm:$0xff] (!%p1559_p12)  ;;  %v1298_v26 = vld [vmem:[#allocation2 + $0xc8] sm:$0xff] (!%p1559_p12) }
 0x236   : > { %1261 = vst [vmem:[#allocation2 + $0x1c0] sm:$0xff] %v1197_v33  ;;  %v1125_v39 = vadd.f32 %v1124_v37, %v867_v34  ;;  %v1126_v41 = vpop.f32.mrb[59].mxu0  ;;  %1356 = vst [vmem:[%s2474_s25 + $0x98] sm:$0xff] (!%p1559_p12), %v1292_v20  ;;  %v1299_v27 = vld [vmem:[#allocation2 + $0xd0] sm:$0xff] (!%p1559_p12)  ;;  %v1300_v28 = vld [vmem:[#allocation2 + $0xd8] sm:$0xff] (!%p1559_p12) }
 0x237   : > { %1262 = vst [vmem:[#allocation2 + $0x1c8] sm:$0xff] %v1198_v35  ;;  %v1127_v42 = vadd.f32 %v1126_v41, %v869_v38  ;;  %1357 = vst [vmem:[%s2474_s25 + $0xa0] sm:$0xff] (!%p1559_p12), %v1293_v21  ;;  %v1301_v29 = vld [vmem:[#allocation2 + $0xe0] sm:$0xff] (!%p1559_p12)  ;;  %v1302_v30 = vld [vmem:[#allocation2 + $0xe8] sm:$0xff] (!%p1559_p12) }
 0x238   : > { %v1199_v43 = vadd.f32 %v1125_v39, %v365_v36  ;;  %v873_v44 = vpop.f32.mrb[60].mxu1  ;;  %1358 = vst [vmem:[%s2474_s25 + $0xa8] sm:$0xff] (!%p1559_p12), %v1294_v22  ;;  %1359 = vst [vmem:[%s2474_s25 + $0xb0] sm:$0xff] (!%p1559_p12), %v1295_v23  ;;  %v1303_v31 = vld [vmem:[#allocation2 + $0xf0] sm:$0xff] (!%p1559_p12)  ;;  %v1304_v32 = vld [vmem:[#allocation2 + $0xf8] sm:$0xff] (!%p1559_p12) }
 0x239   : > { %v1200_v45 = vadd.f32 %v1127_v42, %v366_v40  ;;  %v1130_v47 = vpop.f32.mrb[60].mxu0  ;;  %v875_v48 = vpop.f32.mrb[61].mxu1  ;;  %1360 = vst [vmem:[%s2474_s25 + $0xb8] sm:$0xff] (!%p1559_p12), %v1296_v24  ;;  %1361 = vst [vmem:[%s2474_s25 + $0xc0] sm:$0xff] (!%p1559_p12), %v1297_v25  ;;  %v1305_v33 = vld [vmem:[#allocation2 + $0x100] sm:$0xff] (!%p1559_p12)  ;;  %v1306_v34 = vld [vmem:[#allocation2 + $0x108] sm:$0xff] (!%p1559_p12) }
 0x23a   : > { %1263 = vst [vmem:[#allocation2 + $0x1d0] sm:$0xff] %v1199_v43  ;;  %v1131_v49 = vadd.f32 %v1130_v47, %v873_v44  ;;  %v1132_v51 = vpop.f32.mrb[61].mxu0  ;;  %1362 = vst [vmem:[%s2474_s25 + $0xc8] sm:$0xff] (!%p1559_p12), %v1298_v26  ;;  %v1307_v35 = vld [vmem:[#allocation2 + $0x110] sm:$0xff] (!%p1559_p12)  ;;  %v1308_v36 = vld [vmem:[#allocation2 + $0x118] sm:$0xff] (!%p1559_p12) }
 0x23b   : > { %1264 = vst [vmem:[#allocation2 + $0x1d8] sm:$0xff] %v1200_v45  ;;  %v1133_v52 = vadd.f32 %v1132_v51, %v875_v48  ;;  %1363 = vst [vmem:[%s2474_s25 + $0xd0] sm:$0xff] (!%p1559_p12), %v1299_v27  ;;  %v1309_v37 = vld [vmem:[#allocation2 + $0x120] sm:$0xff] (!%p1559_p12)  ;;  %v1310_v38 = vld [vmem:[#allocation2 + $0x128] sm:$0xff] (!%p1559_p12) }
 0x23c   : > { %v1201_v53 = vadd.f32 %v1131_v49, %v367_v46  ;;  %v879_v54 = vpop.f32.mrb[62].mxu1  ;;  %1364 = vst [vmem:[%s2474_s25 + $0xd8] sm:$0xff] (!%p1559_p12), %v1300_v28  ;;  %1365 = vst [vmem:[%s2474_s25 + $0xe0] sm:$0xff] (!%p1559_p12), %v1301_v29  ;;  %v1311_v39 = vld [vmem:[#allocation2 + $0x130] sm:$0xff] (!%p1559_p12)  ;;  %v1312_v40 = vld [vmem:[#allocation2 + $0x138] sm:$0xff] (!%p1559_p12) }
 0x23d   : > { %v1202_v55 = vadd.f32 %v1133_v52, %v368_v50  ;;  %v1136_v57 = vpop.f32.mrb[62].mxu0  ;;  %v881_v58 = vpop.f32.mrb[63].mxu1  ;;  %1272 = sbr.rel (%p1559_p12) target bundleno = 593 (0x251), region = 44  ;;  %1366 = vst [vmem:[%s2474_s25 + $0xe8] sm:$0xff] (!%p1559_p12), %v1302_v30  ;;  %1367 = vst [vmem:[%s2474_s25 + $0xf0] sm:$0xff] (!%p1559_p12), %v1303_v31  ;;  %v1313_v41 = vld [vmem:[#allocation2 + $0x140] sm:$0xff] (!%p1559_p12) }
 0x23e   : > { %1265 = vst [vmem:[#allocation2 + $0x1e0] sm:$0xff] %v1201_v53  ;;  %v1137_v59 = vadd.f32 %v1136_v57, %v879_v54  ;;  %v1138_v61 = vpop.f32.mrb[63].mxu0  ;;  %1368 = vst [vmem:[%s2474_s25 + $0xf8] sm:$0xff] (!%p1559_p12), %v1304_v32  ;;  %v1314_v42 = vld [vmem:[#allocation2 + $0x148] sm:$0xff] (!%p1559_p12)  ;;  %v1315_v43 = vld [vmem:[#allocation2 + $0x150] sm:$0xff] (!%p1559_p12) }
 0x23f   : > { %1266 = vst [vmem:[#allocation2 + $0x1e8] sm:$0xff] %v1202_v55  ;;  %v1139_v62 = vadd.f32 %v1138_v61, %v881_v58  ;;  %1369 = vst [vmem:[%s2474_s25 + $0x100] sm:$0xff] (!%p1559_p12), %v1305_v33  ;;  %v1316_v44 = vld [vmem:[#allocation2 + $0x158] sm:$0xff] (!%p1559_p12)  ;;  %v1317_v45 = vld [vmem:[#allocation2 + $0x160] sm:$0xff] (!%p1559_p12) }
 0x240   : > { %v1203_v63 = vadd.f32 %v1137_v59, %v369_v56  ;;  %1370 = vst [vmem:[%s2474_s25 + $0x108] sm:$0xff] (!%p1559_p12), %v1306_v34  ;;  %1371 = vst [vmem:[%s2474_s25 + $0x110] sm:$0xff] (!%p1559_p12), %v1307_v35  ;;  %v1318_v46 = vld [vmem:[#allocation2 + $0x168] sm:$0xff] (!%p1559_p12)  ;;  %v1319_v47 = vld [vmem:[#allocation2 + $0x170] sm:$0xff] (!%p1559_p12) }
 0x241   : > { %v1204_v0 = vadd.f32 %v1139_v62, %v370_v60  ;;  %1372 = vst [vmem:[%s2474_s25 + $0x118] sm:$0xff] (!%p1559_p12), %v1308_v36  ;;  %1373 = vst [vmem:[%s2474_s25 + $0x120] sm:$0xff] (!%p1559_p12), %v1309_v37  ;;  %v1320_v48 = vld [vmem:[#allocation2 + $0x178] sm:$0xff] (!%p1559_p12)  ;;  %v1321_v49 = vld [vmem:[#allocation2 + $0x180] sm:$0xff] (!%p1559_p12) }
 0x242   : > { %1267 = vst [vmem:[#allocation2 + $0x1f0] sm:$0xff] %v1203_v63  ;;  %1374 = vst [vmem:[%s2474_s25 + $0x128] sm:$0xff] (!%p1559_p12), %v1310_v38  ;;  %v1322_v50 = vld [vmem:[#allocation2 + $0x188] sm:$0xff] (!%p1559_p12)  ;;  %v1323_v51 = vld [vmem:[#allocation2 + $0x190] sm:$0xff] (!%p1559_p12) }
 0x243   : > { %1268 = vst [vmem:[#allocation2 + $0x1f8] sm:$0xff] %v1204_v0  ;;  %1375 = vst [vmem:[%s2474_s25 + $0x130] sm:$0xff] (!%p1559_p12), %v1311_v39  ;;  %v1324_v52 = vld [vmem:[#allocation2 + $0x198] sm:$0xff] (!%p1559_p12)  ;;  %v1325_v53 = vld [vmem:[#allocation2 + $0x1a0] sm:$0xff] (!%p1559_p12) }
 0x244   : > { %1376 = vst [vmem:[%s2474_s25 + $0x138] sm:$0xff] %v1312_v40  ;;  %1377 = vst [vmem:[%s2474_s25 + $0x140] sm:$0xff] %v1313_v41  ;;  %v1326_v54 = vld [vmem:[#allocation2 + $0x1a8] sm:$0xff]  ;;  %v1327_v55 = vld [vmem:[#allocation2 + $0x1b0] sm:$0xff] }
 0x245   : > { %1378 = vst [vmem:[%s2474_s25 + $0x148] sm:$0xff] %v1314_v42  ;;  %1379 = vst [vmem:[%s2474_s25 + $0x150] sm:$0xff] %v1315_v43  ;;  %v1328_v56 = vld [vmem:[#allocation2 + $0x1b8] sm:$0xff]  ;;  %v1329_v57 = vld [vmem:[#allocation2 + $0x1c0] sm:$0xff] }
 0x246   : > { %1380 = vst [vmem:[%s2474_s25 + $0x158] sm:$0xff] %v1316_v44  ;;  %1381 = vst [vmem:[%s2474_s25 + $0x160] sm:$0xff] %v1317_v45  ;;  %v1330_v58 = vld [vmem:[#allocation2 + $0x1c8] sm:$0xff]  ;;  %v1331_v59 = vld [vmem:[#allocation2 + $0x1d0] sm:$0xff] }
 0x247   : > { %1382 = vst [vmem:[%s2474_s25 + $0x168] sm:$0xff] %v1318_v46  ;;  %1383 = vst [vmem:[%s2474_s25 + $0x170] sm:$0xff] %v1319_v47  ;;  %v1332_v60 = vld [vmem:[#allocation2 + $0x1d8] sm:$0xff]  ;;  %v1333_v61 = vld [vmem:[#allocation2 + $0x1e0] sm:$0xff] }
 0x248   : > { %1384 = vst [vmem:[%s2474_s25 + $0x178] sm:$0xff] %v1320_v48  ;;  %1385 = vst [vmem:[%s2474_s25 + $0x180] sm:$0xff] %v1321_v49  ;;  %v1334_v62 = vld [vmem:[#allocation2 + $0x1e8] sm:$0xff] }
 0x249   : > { %1386 = vst [vmem:[%s2474_s25 + $0x188] sm:$0xff] %v1322_v50  ;;  %1387 = vst [vmem:[%s2474_s25 + $0x190] sm:$0xff] %v1323_v51  ;;  %v1335_v63 = vld [vmem:[#allocation2 + $0x1f0] sm:$0xff] }
 0x24a   : > { %1388 = vst [vmem:[%s2474_s25 + $0x198] sm:$0xff] %v1324_v52  ;;  %1389 = vst [vmem:[%s2474_s25 + $0x1a0] sm:$0xff] %v1325_v53  ;;  %v1336_v0 = vld [vmem:[#allocation2 + $0x1f8] sm:$0xff] }
 0x24b   : > { %1390 = vst [vmem:[%s2474_s25 + $0x1a8] sm:$0xff] %v1326_v54  ;;  %1391 = vst [vmem:[%s2474_s25 + $0x1b0] sm:$0xff] %v1327_v55 }
 0x24c   : > { %1392 = vst [vmem:[%s2474_s25 + $0x1b8] sm:$0xff] %v1328_v56  ;;  %1393 = vst [vmem:[%s2474_s25 + $0x1c0] sm:$0xff] %v1329_v57 }
 0x24d   : > { %1394 = vst [vmem:[%s2474_s25 + $0x1c8] sm:$0xff] %v1330_v58  ;;  %1395 = vst [vmem:[%s2474_s25 + $0x1d0] sm:$0xff] %v1331_v59 }
 0x24e   : > { %1396 = vst [vmem:[%s2474_s25 + $0x1d8] sm:$0xff] %v1332_v60  ;;  %1397 = vst [vmem:[%s2474_s25 + $0x1e0] sm:$0xff] %v1333_v61 }
 0x24f   : > { %1398 = vst [vmem:[%s2474_s25 + $0x1e8] sm:$0xff] %v1334_v62  ;;  %1399 = vst [vmem:[%s2474_s25 + $0x1f0] sm:$0xff] %v1335_v63 }
 0x250   : > { %1400 = vst [vmem:[%s2474_s25 + $0x1f8] sm:$0xff] %v1336_v0 }
 0x251 PF: > { %s3009_s27 = sld [smem:[#allocation13_spill]]  ;;  %s3010_s2 = sld [smem:[#allocation14_spill]] }
 0x252   : > { %s1418_s5 = sshll.u32 %s2474_s25, 4  ;;  %s3011_s3 = sld [smem:[#allocation21_spill]]  ;;  %s2865_s5 = int_to_ptr.vmem [resolvable:$true] %s1418_s5 }
 0x253   : > { %s2874_s30 = scalar_lea.sflag [#allocation5], %s230_s29  ;;  %s1978_s28 = scalar_lea.vmem %s2865_s5, 8192 }
 0x254   : > { %p1979_p13 = scmp.ne.s32.totalorder %s2865_s5, %s1978_s28  ;;  %p3012_p1 = scmp.ne.s32.totalorder %s2998_s18, 0 }
 0x255   : > { %s2154_s25 = smov [#allocation8]  }
 0x256   : > { %p1980_p2 = pnand %p1979_p13, %p3012_p1 }
 0x257   : > { %s1562_s20 = sshll.u32 %s3009_s27, 1  ;;  %s1569_s6 = sshll.u32 %s3010_s2, 7 }
 0x258   : > { %s1415_s12 = sadd.s32 %s1569_s6, %s1562_s20  ;;  %p1981_p9 = pneg %p1980_p2 }
 0x259   : > { %s1564_s4 = sshll.u32 %s1415_s12, 7  ;;  %s1982_s27 = sshll.u32 %s2154_s25, 4  ;;  %s1983_s27 = int_to_ptr.vmem [resolvable:$false] %s1982_s27 }
 0x25a   : > { %s2870_s7 = scalar_lea.hbm %s3011_s3, %s1564_s4  ;;  %s1984_s2 = scalar_lea.vmem %s1983_s27, 16384 }
 0x25b   : > { %p1985_p0 = scmp.lt.s32.totalorder %s2865_s5, %s1983_s27  ;;  %p1986_p3 = scmp.lt.s32.totalorder %s1984_s2, %s1978_s28 }
 0x25d   : > { %p1987_p5 = por %p1986_p3, %p1985_p0 }
 0x25f   : > { %p1988_p6 = pnand %p1987_p5, %p1981_p9 }
 0x261   : > { %1991 = shalt.err (!%p1988_p6)
}
 0x262   : > { %s1992_s29 = scalar_lea.hbm %s2870_s7, 8192  ;;  %s1996_s12 = scalar_lea.hbm %s3011_s3, 32768 }
 0x263   : > { %p1993_p8 = scmp.ne.s32.totalorder %s2870_s7, %s1992_s29  ;;  %p1997_p7 = scmp.lt.u32.totalorder %s2870_s7, %s3011_s3 }
 0x264   : > { %p1998_p4 = scmp.lt.u32.totalorder %s1996_s12, %s1992_s29  ;;  %p2000_p13 = scmp.lt.u32.totalorder %s1992_s29, %s2870_s7 }
 0x265   : > { %p1994_p10 = pnand %p1993_p8, %p3012_p1 }
 0x266   : > { %p1999_p12 = por %p1998_p4, %p1997_p7 }
 0x267   : > { %p1995_p11 = pneg %p1994_p10 }
 0x268   : > { %p2001_p2 = por %p2000_p13, %p1999_p12 }
 0x26a   : > { %p2002_p9 = pnand %p2001_p2, %p1995_p11 }
 0x26c   : > { %2005 = shalt.err (!%p2002_p9)
}
 0x26d   : > { %s2155_s23 = smov 256   ;;  %s2156_s28 = smov 512  }
 0x26e   : > { %s2157_s25 = smov 16  }
 0x26f   : > { %1766 = dma.vmem_to_hbm [thread:$0]  (%p3012_p1), %s2865_s5, 8192, %s2870_s7, %s2874_s30, %s2155_s23, %s2156_s28, %s2157_s25  }
 0x270 PF: > { %p1780_p0 = scmp.ge.s32.totalorder %s2144_s24, 2  ;;  %s1433_s27 = sand.u32 1, %s2084_s9  }
 0x271   : > { %p3013_p3 = scmp.ne.s32.totalorder %s3000_s8, 0  ;;  %s1434_s2 = scalar_lea.sflag [#allocation5], %s1433_s27 }
 0x273   : > { %p1776_p5 = pnand %p1780_p0, %p3013_p3 }
 0x275   : > { %2079 = dma.done.wait (!%p1776_p5), %s1434_s2, 8192  }
 0x276   : > { %2081 = vsyncadd (!%p1776_p5), %s1434_s2, 4294959104  ;;  %s21_s24 = sadd.s32 1, %s2144_s24   ;;  %s3015_s20 = sld [smem:[#allocation15_spill]] }
 0x277   : > { %p2903_p6 = scmp.ge.s32.totalorder %s21_s24, 10   ;;  %s3016_s8 = sld [smem:[#allocation16_spill]] }
 0x278   : > { %s3017_s5 = sld [smem:[#allocation18_spill]]  ;;  %s3018_s23 = sld [smem:[#allocation19_spill]] }
 0x279   : > { %s3019_s9 = smov %s2088_s10  ;;  %s3020_s10 = smov %s2092_s11 }
 0x27a   : > { %s3021_s11 = smov %s2402_s0  ;;  %s3022_s12 = smov %s2100_s13 }
 0x27b   : > { %s3023_s13 = smov %s2104_s14  ;;  %s3024_s14 = smov %s2383_s15 }
 0x27c   : > { %s3025_s15 = smov %s2112_s16  ;;  %s3026_s16 = smov %s2116_s17 }
 0x27d   : > { %s3027_s17 = smov %s2399_s19  ;;  %s3028_s18 = smov %s2132_s21 }
 0x27e   : > { %s3029_s19 = smov %s2136_s22  ;;  %s3030_s21 = smov %s3016_s8 }
 0x27f   : > { %s3031_s22 = smov %s3017_s5  ;;  %20 = sbr.rel (!%p2903_p6) target bundleno = 16 (0x10), region = 94 }
 0x286   :  { %1439 = vsyncpa [#allocation4], 1 }
 0x287   :  { %1441 = vsyncpa [#allocation4 + $0x1], 1 }
 0x288   :  { %1442 = vsyncpa [#allocation7], 1 }
 0x289   :  { %1444 = vsyncpa [#allocation7 + $0x1], 1 }
 0x28a   :  { %1445 = vsyncpa [#allocation5], 1 }
 0x28b   :  { %1447 = vsyncpa [#allocation5 + $0x1], 1 }

</bundles_post_ra>
